<compile_context>
chip_gen: v7x
topology: tpu7x:2x2x1
jax: 0.10.0
libtpu: 0.0.40
codegen_flags: <defaults>
</compile_context>

<pallas_src>
import functools
import math

import jax
import jax.numpy as jnp
from jax.experimental import pallas as pl
from jax.experimental.pallas import tpu as pltpu


# ------------------------------ fused kernel --------------------------------

def _bottle2neck_kernel(mask_ref, x_ref, w1_ref, w2_ref, w3_ref, bias_ref,
                        o_ref, *, W, width, scale, nums, Mb):
    x = x_ref[0]                       # (Cin, Mb): input & residual
    masks = mask_ref[...]              # (9, 1, Mb): precomputed boundary masks
    bias = bias_ref[...]               # (c1 + nums*width + cout, 1)
    w2 = w2_ref[...]                   # (nums, width, 9*width), BN scale folded

    c1 = width * scale
    b1 = bias[0:c1]                                        # (c1, 1)
    b3 = bias[c1 + nums * width:]                          # (cout, 1)

    # ---- conv1 (1x1, scale folded) + bias + relu  ->  (c1, Mb) ----
    y1 = jnp.dot(w1_ref[...], x, preferred_element_type=jnp.float32)
    y1 = jnp.maximum(y1 + b1, 0.0)

    # ---- hierarchical 3x3 branches (stype='normal', stride=1) ----
    outs = []
    sp = None
    for i in range(nums):
        spx_i = y1[i * width:(i + 1) * width, :]           # (width, Mb)
        sp = spx_i if i == 0 else sp + spx_i
        # im2col patch built in-register: XLU roll per tap + boundary mask
        # (masks also kill the cyclic wrap of the roll, incl. cross-image).
        taps = []
        for ky in range(3):
            for kx in range(3):
                dy, dx = ky - 1, kx - 1
                if dy == 0 and dx == 0:
                    taps.append(sp)
                else:
                    off = dy * W + dx
                    t = pltpu.roll(sp, shift=(-off) % Mb, axis=1)
                    taps.append(t * masks[ky * 3 + kx])    # (1, Mb) broadcast
        patch = jnp.concatenate(taps, axis=0)              # (9*width, Mb)
        # single K = 9*width MXU contraction per branch
        y = jnp.dot(w2[i], patch, preferred_element_type=jnp.float32)
        bi = bias[c1 + i * width:c1 + (i + 1) * width]     # (width, 1)
        sp = jnp.maximum(y + bi, 0.0)                      # (width, Mb)
        outs.append(sp)
    if scale != 1:                                         # stype == 'normal'
        outs.append(y1[nums * width:, :])
    cat = jnp.concatenate(outs, axis=0)                    # (c1, Mb)

    # ---- conv3 (1x1, scale folded) + bias + residual add + relu ----
    y3 = jnp.dot(w3_ref[...], cat, preferred_element_type=jnp.float32)
    o_ref[0] = jnp.maximum(y3 + b3 + x, 0.0).astype(o_ref.dtype)


# --------------------------- Bottle2neck forward ----------------------------

def bottle2neck_forward(x_nchw, p, *, width, scale, nums, images_per_block=None):
    N, Cin, H, W = x_nchw.shape
    M = H * W
    c1 = width * scale
    cout = p["w3"].shape[1]
    # stride=1 / downsample=None path requires inplanes == planes*expansion
    assert Cin == cout, (Cin, cout)

    # Lane-batching: B images side-by-side on lanes -> fewer, fatter grid steps.
    if images_per_block is None:
        B = max(1, min(N, 512 // M)) if M < 512 else 1
    else:
        B = max(1, min(images_per_block, N))
    while N % B:
        B -= 1
    G = N // B
    Mb = B * M

    # NCHW -> (G, C, B*M) lane-dense slabs (image-major lanes).
    x = x_nchw.reshape(N, Cin, M).astype(jnp.float32)
    x = x.reshape(G, B, Cin, M).transpose(0, 2, 1, 3).reshape(G, Cin, Mb)

    # Fold BN scales into conv weights (per-output-channel row scaling).
    w1f = (p["w1"].T * p["s1"].reshape(c1, 1)).astype(jnp.float32)       # (c1, Cin)
    w2f = jnp.stack([                                                    # (nums, width, 9*width)
        jnp.transpose(w, (3, 0, 1, 2)).reshape(width, 9 * width)
        * s.reshape(width, 1)
        for w, s in zip(p["w2"], p["s2"])]).astype(jnp.float32)
    w3f = (p["w3"].T * p["s3"].reshape(cout, 1)).astype(jnp.float32)     # (cout, c1)

    # Pack all per-channel biases into one operand: [b1 | b2_0..b2_{n-1} | b3].
    bias_all = jnp.concatenate(
        [p["b1"].reshape(c1, 1)]
        + [b.reshape(width, 1) for b in p["b2"]]
        + [p["b3"].reshape(cout, 1)], axis=0).astype(jnp.float32)        # (88, 1)

    # Precompute the nine 3x3 SAME-conv boundary masks (lane-batched layout;
    # hpos uses %H so taps / roll wrap never cross image boundaries).
    pos = jnp.arange(Mb, dtype=jnp.int32)
    wpos = pos % W
    hpos = (pos // W) % H
    mrows = []
    for dy in (-1, 0, 1):
        for dx in (-1, 0, 1):
            valid = ((wpos + dx >= 0) & (wpos + dx < W) &
                     (hpos + dy >= 0) & (hpos + dy < H))
            mrows.append(valid.astype(jnp.float32))
    mask_arr = jnp.stack(mrows).reshape(9, 1, Mb)

    kernel = functools.partial(_bottle2neck_kernel, W=W, width=width,
                               scale=scale, nums=nums, Mb=Mb)

    def fixed(shape):
        nd = len(shape)
        return pl.BlockSpec(shape, lambda g, _nd=nd: (0,) * _nd)

    out = pl.pallas_call(
        kernel,
        out_shape=jax.ShapeDtypeStruct((G, cout, Mb), jnp.float32),
        grid=(G,),
        in_specs=[
            fixed((9, 1, Mb)),                              # boundary masks
            pl.BlockSpec((1, Cin, Mb), lambda g: (g, 0, 0)),  # per-step input
            fixed((c1, Cin)),                               # w1 (scale-folded)
            fixed((nums, width, 9 * width)),                # w2 (scale-folded)
            fixed((cout, c1)),                              # w3 (scale-folded)
            fixed((c1 + nums * width + cout, 1)),           # packed biases
        ],
        out_specs=pl.BlockSpec((1, cout, Mb), lambda g: (g, 0, 0)),
        compiler_params=pltpu.CompilerParams(
            dimension_semantics=("parallel",)),             # v7x: 2 TCs split steps
    )(mask_arr, x, w1f, w2f, w3f, bias_all)

    out = out.reshape(G, cout, B, M).transpose(0, 2, 1, 3)
    return out.reshape(N, cout, H, W)                       # back to NCHW


# ------------------------------- parameters ---------------------------------

def _fold_bn(gamma, beta, mean, var, eps=1e-5):
    s = gamma / jnp.sqrt(var + eps)
    b = beta - mean * s
    return (s.reshape(1, -1).astype(jnp.float32),
            b.reshape(1, -1).astype(jnp.float32))


def _rand_bn(key, c):
    k1, k2, k3, k4 = jax.random.split(key, 4)
    gamma = jax.random.uniform(k1, (c,), jnp.float32, 0.5, 1.5)
    beta = 0.1 * jax.random.normal(k2, (c,), jnp.float32)
    mean = 0.1 * jax.random.normal(k3, (c,), jnp.float32)
    var = jax.random.uniform(k4, (c,), jnp.float32, 0.5, 1.5)
    return _fold_bn(gamma, beta, mean, var)


def make_params(key, inplanes, planes, width, scale, nums):
    expansion = 4
    keys = jax.random.split(key, 4 + 2 * nums)
    p = {}
    c1 = width * scale
    p["w1"] = (jax.random.normal(keys[0], (inplanes, c1), jnp.float32)
               / math.sqrt(inplanes))
    p["s1"], p["b1"] = _rand_bn(keys[1], c1)
    p["w2"], p["s2"], p["b2"] = [], [], []
    for i in range(nums):
        w = (jax.random.normal(keys[4 + 2 * i], (3, 3, width, width),
                               jnp.float32) / math.sqrt(9 * width))
        s, b = _rand_bn(keys[5 + 2 * i], width)
        p["w2"].append(w)
        p["s2"].append(s)
        p["b2"].append(b)
    cout = planes * expansion
    p["w3"] = (jax.random.normal(keys[2], (c1, cout), jnp.float32)
               / math.sqrt(c1))
    p["s3"], p["b3"] = _rand_bn(keys[3], cout)
    return p


# ------------------------------- pure-JAX ref --------------------------------

def ref_forward(x_nchw, p, *, width, scale, nums):
    x = jnp.transpose(x_nchw, (0, 2, 3, 1)).astype(jnp.float32)
    N, H, W, C = x.shape
    out = jnp.maximum(x.reshape(-1, C) @ p["w1"] * p["s1"] + p["b1"], 0.0)
    out = out.reshape(N, H, W, -1)
    spx = [out[..., i * width:(i + 1) * width] for i in range(scale)]
    sps = []
    sp = None
    for i in range(nums):
        sp = spx[i] if i == 0 else sp + spx[i]
        y = jax.lax.conv_general_dilated(
            sp, p["w2"][i], (1, 1), "SAME",
            dimension_numbers=("NHWC", "HWIO", "NHWC"))
        sp = jnp.maximum(y * p["s2"][i][0] + p["b2"][i][0], 0.0)
        sps.append(sp)
    if scale != 1:
        sps.append(spx[nums])
    cat = jnp.concatenate(sps, axis=-1)
    y = cat.reshape(-1, cat.shape[-1]) @ p["w3"] * p["s3"] + p["b3"]
    y = jnp.maximum(y.reshape(N, H, W, -1) + x, 0.0)
    return jnp.transpose(y, (0, 3, 1, 2))


# ---------------------------------- main -------------------------------------

if __name__ == "__main__":
    # inplanes must equal planes*expansion for the residual add
    # (downsample=None, stride=1).
    inplanes, planes, baseWidth, scale_ = 32, 8, 64, 4
    width = int(math.floor(planes * (baseWidth / 64.0)))  # 8
    nums = scale_ - 1                                      # 3
    N, H, W = 2, 16, 16

    key = jax.random.PRNGKey(0)
    kx, kp = jax.random.split(key)
    x = jax.random.normal(kx, (N, inplanes, H, W), jnp.float32)
    params = make_params(kp, inplanes, planes, width, scale_, nums)

    out = bottle2neck_forward(x, params, width=width, scale=scale_, nums=nums)
    out = jax.block_until_ready(out)

    ref = ref_forward(x, params, width=width, scale=scale_, nums=nums)
    assert out.shape == (N, planes * 4, H, W), out.shape
    assert jnp.allclose(out, ref, atol=1e-4, rtol=1e-4), float(
        jnp.max(jnp.abs(out - ref)))

    print("KERNEL_OK")
</pallas_src>

<mosaic_0001>
module attributes {stable_mosaic.version = 11 : i64} {
  func.func @_bottle2neck_kernel(%arg0: i32, %arg1: memref<9x1x512xf32, #tpu.memory_space<vmem>>, %arg2: memref<1x32x512xf32, #tpu.memory_space<vmem>>, %arg3: memref<32x32xf32, #tpu.memory_space<vmem>>, %arg4: memref<3x8x72xf32, #tpu.memory_space<vmem>>, %arg5: memref<32x32xf32, #tpu.memory_space<vmem>>, %arg6: memref<88x1xf32, #tpu.memory_space<vmem>>, %arg7: memref<1x32x512xf32, #tpu.memory_space<vmem>>) attributes {dimension_semantics = [#tpu.dimension_semantics<parallel>], iteration_bounds = array<i64: 1>, scalar_prefetch = 0 : i64, scratch_operands = 0 : i64, tpu.core_type = #tpu.core_type<tc>, window_params = [{pipeline_mode = #tpu.pipeline_mode<synchronous>, transform_indices = @transform_0, window_bounds = array<i64: 9, 1, 512>}, {transform_indices = @transform_1, window_bounds = array<i64: 1, 32, 512>}, {pipeline_mode = #tpu.pipeline_mode<synchronous>, transform_indices = @transform_2, window_bounds = array<i64: 32, 32>}, {pipeline_mode = #tpu.pipeline_mode<synchronous>, transform_indices = @transform_3, window_bounds = array<i64: 3, 8, 72>}, {pipeline_mode = #tpu.pipeline_mode<synchronous>, transform_indices = @transform_4, window_bounds = array<i64: 32, 32>}, {pipeline_mode = #tpu.pipeline_mode<synchronous>, transform_indices = @transform_5, window_bounds = array<i64: 88, 1>}, {transform_indices = @transform_6, window_bounds = array<i64: 1, 32, 512>}]} {
    %c0 = arith.constant 0 : index
    %c0_0 = arith.constant 0 : index
    %c0_1 = arith.constant 0 : index
    %0 = vector.load %arg2[%c0, %c0_0, %c0_1] : memref<1x32x512xf32, #tpu.memory_space<vmem>>, vector<1x32x512xf32>
    %1 = vector.shape_cast %0 : vector<1x32x512xf32> to vector<32x512xf32>
    %c0_2 = arith.constant 0 : index
    %c0_3 = arith.constant 0 : index
    %c0_4 = arith.constant 0 : index
    %2 = vector.load %arg1[%c0_2, %c0_3, %c0_4] : memref<9x1x512xf32, #tpu.memory_space<vmem>>, vector<9x1x512xf32>
    %c0_5 = arith.constant 0 : index
    %c0_6 = arith.constant 0 : index
    %3 = vector.load %arg6[%c0_5, %c0_6] : memref<88x1xf32, #tpu.memory_space<vmem>>, vector<88x1xf32>
    %c0_7 = arith.constant 0 : index
    %c0_8 = arith.constant 0 : index
    %c0_9 = arith.constant 0 : index
    %4 = vector.load %arg4[%c0_7, %c0_8, %c0_9] : memref<3x8x72xf32, #tpu.memory_space<vmem>>, vector<3x8x72xf32>
    %5 = vector.extract_strided_slice %3 {offsets = [0, 0], sizes = [32, 1], strides = [1, 1]} : vector<88x1xf32> to vector<32x1xf32>
    %6 = vector.extract_strided_slice %3 {offsets = [56, 0], sizes = [32, 1], strides = [1, 1]} : vector<88x1xf32> to vector<32x1xf32>
    %c0_10 = arith.constant 0 : index
    %c0_11 = arith.constant 0 : index
    %7 = vector.load %arg3[%c0_10, %c0_11] : memref<32x32xf32, #tpu.memory_space<vmem>>, vector<32x32xf32>
    %cst = arith.constant dense<0.000000e+00> : vector<32x512xf32>
    %8 = tpu.matmul %7, %1, %cst {dimension_numbers = #tpu.dot_dimension_numbers<[1], [0], [0], [1], [0, 0, 1, 1], [], []>} : vector<32x32xf32>, vector<32x512xf32>, vector<32x512xf32> -> vector<32x512xf32>
    %9 = vector.broadcast %5 : vector<32x1xf32> to vector<32x512xf32>
    %10 = arith.addf %8, %9 : vector<32x512xf32>
    %cst_12 = arith.constant 0.000000e+00 : f32
    %11 = vector.broadcast %cst_12 : f32 to vector<32x512xf32>
    %12 = arith.maximumf %10, %11 : vector<32x512xf32>
    %13 = vector.extract_strided_slice %12 {offsets = [0, 0], sizes = [8, 512], strides = [1, 1]} : vector<32x512xf32> to vector<8x512xf32>
    %c17_i32 = arith.constant 17 : i32
    %14 = tpu.dynamic_rotate %13 by %c17_i32 dim 1 : vector<8x512xf32>, i32 -> vector<8x512xf32>
    %15 = vector.extract_strided_slice %2 {offsets = [0, 0, 0], sizes = [1, 1, 512], strides = [1, 1, 1]} : vector<9x1x512xf32> to vector<1x1x512xf32>
    %16 = vector.shape_cast %15 : vector<1x1x512xf32> to vector<1x512xf32>
    %17 = vector.broadcast %16 : vector<1x512xf32> to vector<8x512xf32>
    %18 = arith.mulf %14, %17 : vector<8x512xf32>
    %c16_i32 = arith.constant 16 : i32
    %19 = tpu.dynamic_rotate %13 by %c16_i32 dim 1 : vector<8x512xf32>, i32 -> vector<8x512xf32>
    %20 = vector.extract_strided_slice %2 {offsets = [1, 0, 0], sizes = [1, 1, 512], strides = [1, 1, 1]} : vector<9x1x512xf32> to vector<1x1x512xf32>
    %21 = vector.shape_cast %20 : vector<1x1x512xf32> to vector<1x512xf32>
    %22 = vector.broadcast %21 : vector<1x512xf32> to vector<8x512xf32>
    %23 = arith.mulf %19, %22 : vector<8x512xf32>
    %c15_i32 = arith.constant 15 : i32
    %24 = tpu.dynamic_rotate %13 by %c15_i32 dim 1 : vector<8x512xf32>, i32 -> vector<8x512xf32>
    %25 = vector.extract_strided_slice %2 {offsets = [2, 0, 0], sizes = [1, 1, 512], strides = [1, 1, 1]} : vector<9x1x512xf32> to vector<1x1x512xf32>
    %26 = vector.shape_cast %25 : vector<1x1x512xf32> to vector<1x512xf32>
    %27 = vector.broadcast %26 : vector<1x512xf32> to vector<8x512xf32>
    %28 = arith.mulf %24, %27 : vector<8x512xf32>
    %c1_i32 = arith.constant 1 : i32
    %29 = tpu.dynamic_rotate %13 by %c1_i32 dim 1 : vector<8x512xf32>, i32 -> vector<8x512xf32>
    %30 = vector.extract_strided_slice %2 {offsets = [3, 0, 0], sizes = [1, 1, 512], strides = [1, 1, 1]} : vector<9x1x512xf32> to vector<1x1x512xf32>
    %31 = vector.shape_cast %30 : vector<1x1x512xf32> to vector<1x512xf32>
    %32 = vector.broadcast %31 : vector<1x512xf32> to vector<8x512xf32>
    %33 = arith.mulf %29, %32 : vector<8x512xf32>
    %c511_i32 = arith.constant 511 : i32
    %34 = tpu.dynamic_rotate %13 by %c511_i32 dim 1 : vector<8x512xf32>, i32 -> vector<8x512xf32>
    %35 = vector.extract_strided_slice %2 {offsets = [5, 0, 0], sizes = [1, 1, 512], strides = [1, 1, 1]} : vector<9x1x512xf32> to vector<1x1x512xf32>
    %36 = vector.shape_cast %35 : vector<1x1x512xf32> to vector<1x512xf32>
    %37 = vector.broadcast %36 : vector<1x512xf32> to vector<8x512xf32>
    %38 = arith.mulf %34, %37 : vector<8x512xf32>
    %c497_i32 = arith.constant 497 : i32
    %39 = tpu.dynamic_rotate %13 by %c497_i32 dim 1 : vector<8x512xf32>, i32 -> vector<8x512xf32>
    %40 = vector.extract_strided_slice %2 {offsets = [6, 0, 0], sizes = [1, 1, 512], strides = [1, 1, 1]} : vector<9x1x512xf32> to vector<1x1x512xf32>
    %41 = vector.shape_cast %40 : vector<1x1x512xf32> to vector<1x512xf32>
    %42 = vector.broadcast %41 : vector<1x512xf32> to vector<8x512xf32>
    %43 = arith.mulf %39, %42 : vector<8x512xf32>
    %c496_i32 = arith.constant 496 : i32
    %44 = tpu.dynamic_rotate %13 by %c496_i32 dim 1 : vector<8x512xf32>, i32 -> vector<8x512xf32>
    %45 = vector.extract_strided_slice %2 {offsets = [7, 0, 0], sizes = [1, 1, 512], strides = [1, 1, 1]} : vector<9x1x512xf32> to vector<1x1x512xf32>
    %46 = vector.shape_cast %45 : vector<1x1x512xf32> to vector<1x512xf32>
    %47 = vector.broadcast %46 : vector<1x512xf32> to vector<8x512xf32>
    %48 = arith.mulf %44, %47 : vector<8x512xf32>
    %c495_i32 = arith.constant 495 : i32
    %49 = tpu.dynamic_rotate %13 by %c495_i32 dim 1 : vector<8x512xf32>, i32 -> vector<8x512xf32>
    %50 = vector.extract_strided_slice %2 {offsets = [8, 0, 0], sizes = [1, 1, 512], strides = [1, 1, 1]} : vector<9x1x512xf32> to vector<1x1x512xf32>
    %51 = vector.shape_cast %50 : vector<1x1x512xf32> to vector<1x512xf32>
    %52 = vector.broadcast %51 : vector<1x512xf32> to vector<8x512xf32>
    %53 = arith.mulf %49, %52 : vector<8x512xf32>
    %54 = tpu.concatenate %18, %23, %28, %33, %13, %38, %43, %48, %53 in 0 : vector<8x512xf32>, vector<8x512xf32>, vector<8x512xf32>, vector<8x512xf32>, vector<8x512xf32>, vector<8x512xf32>, vector<8x512xf32>, vector<8x512xf32>, vector<8x512xf32> -> vector<72x512xf32>
    %55 = vector.extract_strided_slice %4 {offsets = [0, 0, 0], sizes = [1, 8, 72], strides = [1, 1, 1]} : vector<3x8x72xf32> to vector<1x8x72xf32>
    %56 = vector.shape_cast %55 : vector<1x8x72xf32> to vector<8x72xf32>
    %cst_13 = arith.constant dense<0.000000e+00> : vector<8x512xf32>
    %57 = tpu.matmul %56, %54, %cst_13 {dimension_numbers = #tpu.dot_dimension_numbers<[1], [0], [0], [1], [0, 0, 1, 1], [], []>} : vector<8x72xf32>, vector<72x512xf32>, vector<8x512xf32> -> vector<8x512xf32>
    %58 = vector.extract_strided_slice %3 {offsets = [32, 0], sizes = [8, 1], strides = [1, 1]} : vector<88x1xf32> to vector<8x1xf32>
    %59 = vector.broadcast %58 : vector<8x1xf32> to vector<8x512xf32>
    %60 = arith.addf %57, %59 : vector<8x512xf32>
    %cst_14 = arith.constant 0.000000e+00 : f32
    %61 = vector.broadcast %cst_14 : f32 to vector<8x512xf32>
    %62 = arith.maximumf %60, %61 : vector<8x512xf32>
    %63 = vector.extract_strided_slice %12 {offsets = [8, 0], sizes = [8, 512], strides = [1, 1]} : vector<32x512xf32> to vector<8x512xf32>
    %64 = arith.addf %62, %63 : vector<8x512xf32>
    %c17_i32_15 = arith.constant 17 : i32
    %65 = tpu.dynamic_rotate %64 by %c17_i32_15 dim 1 : vector<8x512xf32>, i32 -> vector<8x512xf32>
    %66 = vector.extract_strided_slice %2 {offsets = [0, 0, 0], sizes = [1, 1, 512], strides = [1, 1, 1]} : vector<9x1x512xf32> to vector<1x1x512xf32>
    %67 = vector.shape_cast %66 : vector<1x1x512xf32> to vector<1x512xf32>
    %68 = vector.broadcast %67 : vector<1x512xf32> to vector<8x512xf32>
    %69 = arith.mulf %65, %68 : vector<8x512xf32>
    %c16_i32_16 = arith.constant 16 : i32
    %70 = tpu.dynamic_rotate %64 by %c16_i32_16 dim 1 : vector<8x512xf32>, i32 -> vector<8x512xf32>
    %71 = vector.extract_strided_slice %2 {offsets = [1, 0, 0], sizes = [1, 1, 512], strides = [1, 1, 1]} : vector<9x1x512xf32> to vector<1x1x512xf32>
    %72 = vector.shape_cast %71 : vector<1x1x512xf32> to vector<1x512xf32>
    %73 = vector.broadcast %72 : vector<1x512xf32> to vector<8x512xf32>
    %74 = arith.mulf %70, %73 : vector<8x512xf32>
    %c15_i32_17 = arith.constant 15 : i32
    %75 = tpu.dynamic_rotate %64 by %c15_i32_17 dim 1 : vector<8x512xf32>, i32 -> vector<8x512xf32>
    %76 = vector.extract_strided_slice %2 {offsets = [2, 0, 0], sizes = [1, 1, 512], strides = [1, 1, 1]} : vector<9x1x512xf32> to vector<1x1x512xf32>
    %77 = vector.shape_cast %76 : vector<1x1x512xf32> to vector<1x512xf32>
    %78 = vector.broadcast %77 : vector<1x512xf32> to vector<8x512xf32>
    %79 = arith.mulf %75, %78 : vector<8x512xf32>
    %c1_i32_18 = arith.constant 1 : i32
    %80 = tpu.dynamic_rotate %64 by %c1_i32_18 dim 1 : vector<8x512xf32>, i32 -> vector<8x512xf32>
    %81 = vector.extract_strided_slice %2 {offsets = [3, 0, 0], sizes = [1, 1, 512], strides = [1, 1, 1]} : vector<9x1x512xf32> to vector<1x1x512xf32>
    %82 = vector.shape_cast %81 : vector<1x1x512xf32> to vector<1x512xf32>
    %83 = vector.broadcast %82 : vector<1x512xf32> to vector<8x512xf32>
    %84 = arith.mulf %80, %83 : vector<8x512xf32>
    %c511_i32_19 = arith.constant 511 : i32
    %85 = tpu.dynamic_rotate %64 by %c511_i32_19 dim 1 : vector<8x512xf32>, i32 -> vector<8x512xf32>
    %86 = vector.extract_strided_slice %2 {offsets = [5, 0, 0], sizes = [1, 1, 512], strides = [1, 1, 1]} : vector<9x1x512xf32> to vector<1x1x512xf32>
    %87 = vector.shape_cast %86 : vector<1x1x512xf32> to vector<1x512xf32>
    %88 = vector.broadcast %87 : vector<1x512xf32> to vector<8x512xf32>
    %89 = arith.mulf %85, %88 : vector<8x512xf32>
    %c497_i32_20 = arith.constant 497 : i32
    %90 = tpu.dynamic_rotate %64 by %c497_i32_20 dim 1 : vector<8x512xf32>, i32 -> vector<8x512xf32>
    %91 = vector.extract_strided_slice %2 {offsets = [6, 0, 0], sizes = [1, 1, 512], strides = [1, 1, 1]} : vector<9x1x512xf32> to vector<1x1x512xf32>
    %92 = vector.shape_cast %91 : vector<1x1x512xf32> to vector<1x512xf32>
    %93 = vector.broadcast %92 : vector<1x512xf32> to vector<8x512xf32>
    %94 = arith.mulf %90, %93 : vector<8x512xf32>
    %c496_i32_21 = arith.constant 496 : i32
    %95 = tpu.dynamic_rotate %64 by %c496_i32_21 dim 1 : vector<8x512xf32>, i32 -> vector<8x512xf32>
    %96 = vector.extract_strided_slice %2 {offsets = [7, 0, 0], sizes = [1, 1, 512], strides = [1, 1, 1]} : vector<9x1x512xf32> to vector<1x1x512xf32>
    %97 = vector.shape_cast %96 : vector<1x1x512xf32> to vector<1x512xf32>
    %98 = vector.broadcast %97 : vector<1x512xf32> to vector<8x512xf32>
    %99 = arith.mulf %95, %98 : vector<8x512xf32>
    %c495_i32_22 = arith.constant 495 : i32
    %100 = tpu.dynamic_rotate %64 by %c495_i32_22 dim 1 : vector<8x512xf32>, i32 -> vector<8x512xf32>
    %101 = vector.extract_strided_slice %2 {offsets = [8, 0, 0], sizes = [1, 1, 512], strides = [1, 1, 1]} : vector<9x1x512xf32> to vector<1x1x512xf32>
    %102 = vector.shape_cast %101 : vector<1x1x512xf32> to vector<1x512xf32>
    %103 = vector.broadcast %102 : vector<1x512xf32> to vector<8x512xf32>
    %104 = arith.mulf %100, %103 : vector<8x512xf32>
    %105 = tpu.concatenate %69, %74, %79, %84, %64, %89, %94, %99, %104 in 0 : vector<8x512xf32>, vector<8x512xf32>, vector<8x512xf32>, vector<8x512xf32>, vector<8x512xf32>, vector<8x512xf32>, vector<8x512xf32>, vector<8x512xf32>, vector<8x512xf32> -> vector<72x512xf32>
    %106 = vector.extract_strided_slice %4 {offsets = [1, 0, 0], sizes = [1, 8, 72], strides = [1, 1, 1]} : vector<3x8x72xf32> to vector<1x8x72xf32>
    %107 = vector.shape_cast %106 : vector<1x8x72xf32> to vector<8x72xf32>
    %cst_23 = arith.constant dense<0.000000e+00> : vector<8x512xf32>
    %108 = tpu.matmul %107, %105, %cst_23 {dimension_numbers = #tpu.dot_dimension_numbers<[1], [0], [0], [1], [0, 0, 1, 1], [], []>} : vector<8x72xf32>, vector<72x512xf32>, vector<8x512xf32> -> vector<8x512xf32>
    %109 = vector.extract_strided_slice %3 {offsets = [40, 0], sizes = [8, 1], strides = [1, 1]} : vector<88x1xf32> to vector<8x1xf32>
    %110 = vector.broadcast %109 : vector<8x1xf32> to vector<8x512xf32>
    %111 = arith.addf %108, %110 : vector<8x512xf32>
    %cst_24 = arith.constant 0.000000e+00 : f32
    %112 = vector.broadcast %cst_24 : f32 to vector<8x512xf32>
    %113 = arith.maximumf %111, %112 : vector<8x512xf32>
    %114 = vector.extract_strided_slice %12 {offsets = [16, 0], sizes = [8, 512], strides = [1, 1]} : vector<32x512xf32> to vector<8x512xf32>
    %115 = arith.addf %113, %114 : vector<8x512xf32>
    %c17_i32_25 = arith.constant 17 : i32
    %116 = tpu.dynamic_rotate %115 by %c17_i32_25 dim 1 : vector<8x512xf32>, i32 -> vector<8x512xf32>
    %117 = vector.extract_strided_slice %2 {offsets = [0, 0, 0], sizes = [1, 1, 512], strides = [1, 1, 1]} : vector<9x1x512xf32> to vector<1x1x512xf32>
    %118 = vector.shape_cast %117 : vector<1x1x512xf32> to vector<1x512xf32>
    %119 = vector.broadcast %118 : vector<1x512xf32> to vector<8x512xf32>
    %120 = arith.mulf %116, %119 : vector<8x512xf32>
    %c16_i32_26 = arith.constant 16 : i32
    %121 = tpu.dynamic_rotate %115 by %c16_i32_26 dim 1 : vector<8x512xf32>, i32 -> vector<8x512xf32>
    %122 = vector.extract_strided_slice %2 {offsets = [1, 0, 0], sizes = [1, 1, 512], strides = [1, 1, 1]} : vector<9x1x512xf32> to vector<1x1x512xf32>
    %123 = vector.shape_cast %122 : vector<1x1x512xf32> to vector<1x512xf32>
    %124 = vector.broadcast %123 : vector<1x512xf32> to vector<8x512xf32>
    %125 = arith.mulf %121, %124 : vector<8x512xf32>
    %c15_i32_27 = arith.constant 15 : i32
    %126 = tpu.dynamic_rotate %115 by %c15_i32_27 dim 1 : vector<8x512xf32>, i32 -> vector<8x512xf32>
    %127 = vector.extract_strided_slice %2 {offsets = [2, 0, 0], sizes = [1, 1, 512], strides = [1, 1, 1]} : vector<9x1x512xf32> to vector<1x1x512xf32>
    %128 = vector.shape_cast %127 : vector<1x1x512xf32> to vector<1x512xf32>
    %129 = vector.broadcast %128 : vector<1x512xf32> to vector<8x512xf32>
    %130 = arith.mulf %126, %129 : vector<8x512xf32>
    %c1_i32_28 = arith.constant 1 : i32
    %131 = tpu.dynamic_rotate %115 by %c1_i32_28 dim 1 : vector<8x512xf32>, i32 -> vector<8x512xf32>
    %132 = vector.extract_strided_slice %2 {offsets = [3, 0, 0], sizes = [1, 1, 512], strides = [1, 1, 1]} : vector<9x1x512xf32> to vector<1x1x512xf32>
    %133 = vector.shape_cast %132 : vector<1x1x512xf32> to vector<1x512xf32>
    %134 = vector.broadcast %133 : vector<1x512xf32> to vector<8x512xf32>
    %135 = arith.mulf %131, %134 : vector<8x512xf32>
    %c511_i32_29 = arith.constant 511 : i32
    %136 = tpu.dynamic_rotate %115 by %c511_i32_29 dim 1 : vector<8x512xf32>, i32 -> vector<8x512xf32>
    %137 = vector.extract_strided_slice %2 {offsets = [5, 0, 0], sizes = [1, 1, 512], strides = [1, 1, 1]} : vector<9x1x512xf32> to vector<1x1x512xf32>
    %138 = vector.shape_cast %137 : vector<1x1x512xf32> to vector<1x512xf32>
    %139 = vector.broadcast %138 : vector<1x512xf32> to vector<8x512xf32>
    %140 = arith.mulf %136, %139 : vector<8x512xf32>
    %c497_i32_30 = arith.constant 497 : i32
    %141 = tpu.dynamic_rotate %115 by %c497_i32_30 dim 1 : vector<8x512xf32>, i32 -> vector<8x512xf32>
    %142 = vector.extract_strided_slice %2 {offsets = [6, 0, 0], sizes = [1, 1, 512], strides = [1, 1, 1]} : vector<9x1x512xf32> to vector<1x1x512xf32>
    %143 = vector.shape_cast %142 : vector<1x1x512xf32> to vector<1x512xf32>
    %144 = vector.broadcast %143 : vector<1x512xf32> to vector<8x512xf32>
    %145 = arith.mulf %141, %144 : vector<8x512xf32>
    %c496_i32_31 = arith.constant 496 : i32
    %146 = tpu.dynamic_rotate %115 by %c496_i32_31 dim 1 : vector<8x512xf32>, i32 -> vector<8x512xf32>
    %147 = vector.extract_strided_slice %2 {offsets = [7, 0, 0], sizes = [1, 1, 512], strides = [1, 1, 1]} : vector<9x1x512xf32> to vector<1x1x512xf32>
    %148 = vector.shape_cast %147 : vector<1x1x512xf32> to vector<1x512xf32>
    %149 = vector.broadcast %148 : vector<1x512xf32> to vector<8x512xf32>
    %150 = arith.mulf %146, %149 : vector<8x512xf32>
    %c495_i32_32 = arith.constant 495 : i32
    %151 = tpu.dynamic_rotate %115 by %c495_i32_32 dim 1 : vector<8x512xf32>, i32 -> vector<8x512xf32>
    %152 = vector.extract_strided_slice %2 {offsets = [8, 0, 0], sizes = [1, 1, 512], strides = [1, 1, 1]} : vector<9x1x512xf32> to vector<1x1x512xf32>
    %153 = vector.shape_cast %152 : vector<1x1x512xf32> to vector<1x512xf32>
    %154 = vector.broadcast %153 : vector<1x512xf32> to vector<8x512xf32>
    %155 = arith.mulf %151, %154 : vector<8x512xf32>
    %156 = tpu.concatenate %120, %125, %130, %135, %115, %140, %145, %150, %155 in 0 : vector<8x512xf32>, vector<8x512xf32>, vector<8x512xf32>, vector<8x512xf32>, vector<8x512xf32>, vector<8x512xf32>, vector<8x512xf32>, vector<8x512xf32>, vector<8x512xf32> -> vector<72x512xf32>
    %157 = vector.extract_strided_slice %4 {offsets = [2, 0, 0], sizes = [1, 8, 72], strides = [1, 1, 1]} : vector<3x8x72xf32> to vector<1x8x72xf32>
    %158 = vector.shape_cast %157 : vector<1x8x72xf32> to vector<8x72xf32>
    %cst_33 = arith.constant dense<0.000000e+00> : vector<8x512xf32>
    %159 = tpu.matmul %158, %156, %cst_33 {dimension_numbers = #tpu.dot_dimension_numbers<[1], [0], [0], [1], [0, 0, 1, 1], [], []>} : vector<8x72xf32>, vector<72x512xf32>, vector<8x512xf32> -> vector<8x512xf32>
    %160 = vector.extract_strided_slice %3 {offsets = [48, 0], sizes = [8, 1], strides = [1, 1]} : vector<88x1xf32> to vector<8x1xf32>
    %161 = vector.broadcast %160 : vector<8x1xf32> to vector<8x512xf32>
    %162 = arith.addf %159, %161 : vector<8x512xf32>
    %cst_34 = arith.constant 0.000000e+00 : f32
    %163 = vector.broadcast %cst_34 : f32 to vector<8x512xf32>
    %164 = arith.maximumf %162, %163 : vector<8x512xf32>
    %165 = vector.extract_strided_slice %12 {offsets = [24, 0], sizes = [8, 512], strides = [1, 1]} : vector<32x512xf32> to vector<8x512xf32>
    %166 = tpu.concatenate %62, %113, %164, %165 in 0 : vector<8x512xf32>, vector<8x512xf32>, vector<8x512xf32>, vector<8x512xf32> -> vector<32x512xf32>
    %c0_35 = arith.constant 0 : index
    %c0_36 = arith.constant 0 : index
    %167 = vector.load %arg5[%c0_35, %c0_36] : memref<32x32xf32, #tpu.memory_space<vmem>>, vector<32x32xf32>
    %cst_37 = arith.constant dense<0.000000e+00> : vector<32x512xf32>
    %168 = tpu.matmul %167, %166, %cst_37 {dimension_numbers = #tpu.dot_dimension_numbers<[1], [0], [0], [1], [0, 0, 1, 1], [], []>} : vector<32x32xf32>, vector<32x512xf32>, vector<32x512xf32> -> vector<32x512xf32>
    %169 = vector.broadcast %6 : vector<32x1xf32> to vector<32x512xf32>
    %170 = arith.addf %168, %169 : vector<32x512xf32>
    %171 = arith.addf %170, %1 : vector<32x512xf32>
    %cst_38 = arith.constant 0.000000e+00 : f32
    %172 = vector.broadcast %cst_38 : f32 to vector<32x512xf32>
    %173 = arith.maximumf %171, %172 : vector<32x512xf32>
    %c0_39 = arith.constant 0 : index
    %c0_40 = arith.constant 0 : index
    %c0_41 = arith.constant 0 : index
    %174 = vector.load %arg7[%c0_39, %c0_40, %c0_41] : memref<1x32x512xf32, #tpu.memory_space<vmem>>, vector<1x32x512xf32>
    %175 = vector.shape_cast %174 : vector<1x32x512xf32> to vector<32x512xf32>
    %176 = vector.shape_cast %173 : vector<32x512xf32> to vector<1x32x512xf32>
    tpu.vector_store %arg7[%c0_39, %c0_40, %c0_41], %176 {strides = array<i32>} : memref<1x32x512xf32, #tpu.memory_space<vmem>>, vector<1x32x512xf32>,
    return
  }
  func.func @transform_0(%arg0: i32) -> (i32, i32, i32) {
    %c0_i32 = arith.constant 0 : i32
    %c0_i32_0 = arith.constant 0 : i32
    %c0_i32_1 = arith.constant 0 : i32
    %c0_i32_2 = arith.constant 0 : i32
    return %c0_i32, %c0_i32_0, %c0_i32_1 : i32, i32, i32
  }
  func.func @transform_1(%arg0: i32) -> (i32, i32, i32) {
    %c0_i32 = arith.constant 0 : i32
    %c0_i32_0 = arith.constant 0 : i32
    %c0_i32_1 = arith.constant 0 : i32
    return %arg0, %c0_i32, %c0_i32_0 : i32, i32, i32
  }
  func.func @transform_2(%arg0: i32) -> (i32, i32) {
    %c0_i32 = arith.constant 0 : i32
    %c0_i32_0 = arith.constant 0 : i32
    %c0_i32_1 = arith.constant 0 : i32
    return %c0_i32, %c0_i32_0 : i32, i32
  }
  func.func @transform_3(%arg0: i32) -> (i32, i32, i32) {
    %c0_i32 = arith.constant 0 : i32
    %c0_i32_0 = arith.constant 0 : i32
    %c0_i32_1 = arith.constant 0 : i32
    %c0_i32_2 = arith.constant 0 : i32
    return %c0_i32, %c0_i32_0, %c0_i32_1 : i32, i32, i32
  }
  func.func @transform_4(%arg0: i32) -> (i32, i32) {
    %c0_i32 = arith.constant 0 : i32
    %c0_i32_0 = arith.constant 0 : i32
    %c0_i32_1 = arith.constant 0 : i32
    return %c0_i32, %c0_i32_0 : i32, i32
  }
  func.func @transform_5(%arg0: i32) -> (i32, i32) {
    %c0_i32 = arith.constant 0 : i32
    %c0_i32_0 = arith.constant 0 : i32
    %c0_i32_1 = arith.constant 0 : i32
    return %c0_i32, %c0_i32_0 : i32, i32
  }
  func.func @transform_6(%arg0: i32) -> (i32, i32, i32) {
    %c0_i32 = arith.constant 0 : i32
    %c0_i32_0 = arith.constant 0 : i32
    %c0_i32_1 = arith.constant 0 : i32
    return %arg0, %c0_i32, %c0_i32_0 : i32, i32, i32
  }
}

</mosaic_0001>

<bundles_post_ra>
// kernel: tpu_custom_call.1
= control target key start
LH: loop header
LB: loop body
LE: loop exit
PB: predicated region body
PF: predicated region fallthrough
CT: control target
= control target key end

     0   :  { %11 = vsyncpa [#allocation3], 0  ;;  %s2854_s0 = inlined_call_operand.vmem [shape: f32[9,1,512], index: 0, kind: input, shape index: {}]   ;;  %s2855_s1 = inlined_call_operand.hbm [shape: f32[1,32,512], index: 1, kind: input, shape index: {}]   ;;  %s2856_s2 = inlined_call_operand.vmem [shape: f32[32,32], index: 2, kind: input, shape index: {}]   ;;  %s2857_s3 = inlined_call_operand.hbm [shape: f32[3,8,72], index: 3, kind: input, shape index: {}]   ;;  %s2858_s4 = inlined_call_operand.vmem [shape: f32[32,32], index: 4, kind: input, shape index: {}]   ;;  %s2859_s5 = inlined_call_operand.vmem [shape: f32[88,1], index: 5, kind: input, shape index: {}]   ;;  %s2860_s6 = inlined_call_operand.hbm [shape: f32[1,32,512], index: 6, kind: output, shape index: {}]  }
   0x1   :  { %12 = vsyncpa [#allocation6], 0 }
   0x2   :  { %13 = vsyncpa [#allocation4], 0  ;;  %s1891_s21 = smov [#allocation2]   ;;  %s1819_s25 = scalar_lea.hbm %s2855_s1, 2048 }
   0x3   :  { %s21_s22 = sshll.u32 %s1891_s21, 4  ;;  %p1820_p0 = scmp.ne.s32.totalorder %s2855_s1, %s1819_s25  ;;  %s22_s22 = int_to_ptr.vmem [resolvable:$true] %s21_s22 }
   0x4   :  { %p1823_p1 = scmp.lt.u32.totalorder %s1819_s25, %s2855_s1 }
   0x6   :  { %p1825_p2 = pnand %p1823_p1, %p1820_p0 }
   0x8   :  { %1828 = shalt.err (!%p1825_p2)
}
   0x9   :  { %s1829_s30 = scalar_lea.vmem %s22_s22, 2048  ;;  %p1834_p4 = scmp.lt.s32.totalorder %s22_s22, %s22_s22 }
   0xa   :  { %p1830_p3 = scmp.ne.s32.totalorder %s22_s22, %s1829_s30  ;;  %p1835_p5 = scmp.lt.s32.totalorder %s1829_s30, %s1829_s30 }
   0xc   :  { %p1836_p6 = por %p1835_p5, %p1834_p4 }
   0xe   :  { %p1837_p7 = pnand %p1836_p6, %p1830_p3 }
  0x10   :  { %1840 = shalt.err (!%p1837_p7)
}
  0x11   :  { %s1892_s7 = smov 512   ;;  %s1893_s8 = smov 32  }
  0x12   :  { %27 = dma.hbm_to_vmem [thread:$0]  %s2855_s1, 2048, %s22_s22, [#allocation3], %s1892_s7, %s1892_s7, %s1893_s8  }
  0x13   :  { %s1894_s11 = smov [#allocation5]   ;;  %s1841_s15 = scalar_lea.hbm %s2857_s3, 384 }
  0x14   :  { %s35_s12 = sshll.u32 %s1894_s11, 4  ;;  %p1842_p8 = scmp.ne.s32.totalorder %s2857_s3, %s1841_s15  ;;  %s36_s12 = int_to_ptr.vmem [resolvable:$true] %s35_s12 }
  0x15   :  { %p1845_p9 = scmp.lt.u32.totalorder %s1841_s15, %s2857_s3 }
  0x17   :  { %p1847_p10 = pnand %p1845_p9, %p1842_p8 }
  0x19   :  { %1850 = shalt.err (!%p1847_p10)
}
  0x1a   :  { %s1851_s20 = scalar_lea.vmem %s36_s12, 384  ;;  %p1856_p12 = scmp.lt.s32.totalorder %s36_s12, %s36_s12 }
  0x1b   :  { %p1852_p11 = scmp.ne.s32.totalorder %s36_s12, %s1851_s20  ;;  %p1857_p13 = scmp.lt.s32.totalorder %s1851_s20, %s1851_s20 }
  0x1d   :  { %p1858_p0 = por %p1857_p13, %p1856_p12 }
  0x1f   :  { %p1859_p1 = pnand %p1858_p0, %p1852_p11 }
  0x21   :  { %1862 = shalt.err (!%p1859_p1)
}
  0x22   :  { %s1895_s1 = smov 128   ;;  %s1896_s21 = smov 8  }
  0x23   :  { %41 = dma.hbm_to_vmem [thread:$0]  %s2857_s3, 384, %s36_s12, [#allocation6], %s1895_s1, %s1895_s1, %s1896_s21  }
  0x24   :  { %1885 = dma.done.wait [#allocation3], 2048  }
  0x25   :  { %1886 = vsyncadd [#allocation3], 4294965248 }
  0x26   :  { %1887 = dma.done.wait [#allocation6], 384  }
  0x27   :  { %1888 = vsyncadd [#allocation6], 4294966912  ;;  %v2861_v0 = vmov 0.0   ;;  %v1898_v1 = vmov 0   ;;  %v53_v2 = vld [vmem:[#allocation2 + $0x8] sm:$0xff]  ;;  %v55_v4 = vld [vmem:[#allocation2 + $0x18] sm:$0xff]  ;;  %v329_v46 = vlaneseq }
  0x28   :  { %191 = vmatprep.mubr.f32.mxu0 %v2861_v0  ;;  %280 = vmatprep.mubr.f32.mxu1 %v2861_v0  ;;  %v57_v3 = vld [vmem:[#allocation2 + $0x28] sm:$0xff]  ;;  %v59_v6 = vld [vmem:[#allocation2 + $0x38] sm:$0xff]  ;;  %v52_v7 = vld [vmem:[#allocation2] sm:$0xff]  ;;  %vm114_vm0 = vcmask 261120   ;;  %s1899_s27 = smov 17   ;;  %s1900_s28 = smov 16  }
  0x29   :  { %1801 = vset.pattern.permute.xlu0 %v1898_v1  ;;  %1802 = vset.pattern.permute.xlu1 %v1898_v1  ;;  %v1656_v5 = vpack.c.bf16 %v57_v3, %v53_v2  ;;  %v56_v8 = vld [vmem:[#allocation2 + $0x20] sm:$0xff]  ;;  %v1664_v9 = vpack.c.bf16 %v59_v6, %v55_v4  ;;  %v54_v11 = vld [vmem:[#allocation2 + $0x10] sm:$0xff]  ;;  %v61_v13 = vld [vmem:[#allocation2 + $0x48] sm:$0xff]  ;;  %s1901_s29 = smov 15   ;;  %s1902_s30 = smov 1   ;;  %v338_v49 = vshrl.u32 %v329_v46, 7 }
  0x2a   :  { %v1658_v10 = vpack.c.bf16 %v56_v8, %v52_v7  ;;  %v58_v12 = vld [vmem:[#allocation2 + $0x30] sm:$0xff]  ;;  %v65_v15 = vld [vmem:[#allocation2 + $0x68] sm:$0xff]  ;;  %v63_v16 = vld [vmem:[#allocation2 + $0x58] sm:$0xff]  ;;  %s1903_s9 = smov 127   ;;  %s1904_s10 = smov 113   ;;  %v2085_v50 = vand.u32 127, %v329_v46 }
  0x2b   :  { %1657 = vmatprep.subr.bf16.mxu0 %v1656_v5  ;;  %v1666_v14 = vpack.c.bf16 %v58_v12, %v54_v11  ;;  %v67_v17 = vld [vmem:[#allocation2 + $0x78] sm:$0xff]  ;;  %1665 = vmatprep.subr.bf16.mxu1 %v1664_v9  ;;  %v1660_v18 = vpack.c.bf16 %v65_v15, %v61_v13  ;;  %v60_v20 = vld [vmem:[#allocation2 + $0x40] sm:$0xff]  ;;  %v62_v22 = vld [vmem:[#allocation2 + $0x50] sm:$0xff]  ;;  %s1905_s17 = smov 112   ;;  %v2087_v53 = vsub.s32 3, %v338_v49  ;;  %v2119_v12 = vsub.s32 1, %v338_v49 }
  0x2c   :  { %1659 = vmatpush1.bf16.msra.mxu0 %v1658_v10  ;;  %v1668_v19 = vpack.c.bf16 %v67_v17, %v63_v16  ;;  %v64_v21 = vld [vmem:[#allocation2 + $0x60] sm:$0xff]  ;;  %v66_v24 = vld [vmem:[#allocation2 + $0x70] sm:$0xff]  ;;  %v91_v41 = vld [vmem:[%s2856_s2 + $0x8] sm:$0xff]  ;;  %vm331_vm1 = vcmp.lt.s32.totalorder %v2085_v50, 17  ;;  %vm369_vm2 = vcmp.lt.s32.totalorder %v2085_v50, 16  ;;  %v2117_v10 = vsub.s32 0, %v338_v49 }
  0x2d   :  { %1667 = vmatpush1.bf16.msra.mxu1 %v1666_v14  ;;  %v1662_v23 = vpack.c.bf16 %v64_v21, %v60_v20  ;;  %v76_v25 = vld [vmem:[%s2859_s5] sm:$0xff]  ;;  %1661 = vmatprep.subr.bf16.mxu0 %v1660_v18  ;;  %v1670_v26 = vpack.c.bf16 %v66_v24, %v62_v22  ;;  %v92_v42 = vld [vmem:[%s2856_s2 + $0x10] sm:$0xff]  ;;  %v93_v43 = vld [vmem:[%s2856_s2 + $0x18] sm:$0xff]  ;;  %v2121_v13 = vsub.s32 2, %v338_v49  ;;  %vm407_vm3 = vcmp.lt.s32.totalorder %v2085_v50, 15 }
  0x2e   :  { %1669 = vmatprep.subr.bf16.mxu1 %v1668_v19  ;;  %96 = vperm.xlu0 %1801, %v76_v25   ;;  %v90_v27 = vld [vmem:[%s2856_s2] sm:$0xff]  ;;  %s1906_s2 = smov 111   ;;  %v77_v45 = vld [vmem:[%s2859_s5 + $0x8] sm:$0xff]  ;;  %vm445_vm4 = vcmp.lt.s32.totalorder %v2085_v50, 1  ;;  %vm483_vm5 = vcmp.lt.s32.totalorder %v2085_v50, 127  ;;  %vm521_vm6 = vcmp.lt.s32.totalorder %v2085_v50, 113 }
  0x2f   :  { %v80_v44 = vld [vmem:[%s2859_s5 + $0x20] sm:$0xff]  ;;  %v70_v15 = vld [vmem:[%s2854_s0 + $0x8] sm:$0xf]  ;;  %v71_v18 = vld [vmem:[%s2854_s0 + $0xc] sm:$0xf]  ;;  %vm559_vm7 = vcmp.lt.s32.totalorder %v2085_v50, 112 }
  0x30   :  { %1663 = vmatpush1.bf16.msra.mxu0 %v1662_v23  ;;  %v2092_v54 = vld [vmem:[%s2854_s0] sm:$0xf]  ;;  %v69_v57 = vld [vmem:[%s2854_s0 + $0x4] sm:$0xf]  ;;  %v2148_v24 = vrot.slane %v70_v15, %v2119_v12  ;;  %v2151_v25 = vrot.slane %v70_v15, %v2121_v13  ;;  %vm597_vm8 = vcmp.lt.s32.totalorder %v2085_v50, 111  ;;  %vm632_vm9 = vcmask 588800  }
  0x31   :  { %1671 = vmatpush1.bf16.msra.mxu1 %v1670_v26  ;;  %v2100_v58 = vrot.slane %v2092_v54, %v2087_v53  ;;  %v2103_v59 = vrot.slane %v69_v57, %v2087_v53  ;;  %v2130_v16 = vrot.slane %v2092_v54, %v2117_v10  ;;  %v2133_v17 = vrot.slane %v69_v57, %v2117_v10 }
  0x32   :  { %v2139_v20 = vrot.slane %v69_v57, %v2119_v12  ;;  %v2142_v21 = vrot.slane %v69_v57, %v2121_v13  ;;  %v2154_v26 = vrot.slane %v70_v15, %v2117_v10  ;;  %v2212_v57 = vrot.slane %v2092_v54, %v2121_v13 }
  0x33   :  { %1634 = vmatmul.mubr.msk.f32.vlgmr.msra.gmra.mrb[0].mxu0 %vm114_vm0, %v90_v27 }
  0x34   :  { %1638 = vmatmul.mubr.msk.f32.vlgmr.msra.gmra.mrb[0].mxu1 %vm114_vm0, %v90_v27  ;;  %197 = vmatprep.mubr.f32.mxu0 %v2861_v0  ;;  %v2157_v27 = vrot.slane %v70_v15, %v2087_v53 }
  0x35   :  { %286 = vmatprep.mubr.f32.mxu1 %v2861_v0 }
  0x37   :  { %1635 = vmatmul.mubr.msk.f32.gmra.mrb[2].mxu0 %vm114_vm0, %v91_v41 }
  0x38   :  { %1639 = vmatmul.mubr.msk.f32.gmra.mrb[2].mxu1 %vm114_vm0, %v91_v41  ;;  %203 = vmatprep.mubr.f32.mxu0 %v2861_v0 }
  0x39   :  { %292 = vmatprep.mubr.f32.mxu1 %v2861_v0 }
  0x3b   :  { %1636 = vmatmul.mubr.msk.f32.gmra.mrb[4].mxu0 %vm114_vm0, %v92_v42 }
  0x3c   :  { %1640 = vmatmul.mubr.msk.f32.gmra.mrb[4].mxu1 %vm114_vm0, %v92_v42  ;;  %209 = vmatprep.mubr.f32.mxu0 %v2861_v0 }
  0x3d   :  { %298 = vmatprep.mubr.f32.mxu1 %v2861_v0 }
  0x3f   :  { %1637 = vmatmul.mubr.msk.f32.gmra.mrb[6].mxu0 %vm114_vm0, %v93_v43 }
  0x40   :  { %1641 = vmatmul.mubr.msk.f32.gmra.mrb[6].mxu1 %vm114_vm0, %v93_v43  ;;  %700 = vmatprep.mubr.f32.mxu0 %v2861_v0 }
  0x41   :  { %771 = vmatprep.mubr.f32.mxu1 %v2861_v0  ;;  %v74_v0 = vld [vmem:[%s2854_s0 + $0x1c] sm:$0xf] }
  0xad   :  { %v97_v28 = vpop.permute.xlu0 %96 }
 0x106   :  { %v193_v29 = vpop.f32.mrb[0].mxu0 }
 0x107   :  { %v194_v30 = vadd.f32 %v193_v29, %v97_v28  ;;  %v282_v31 = vpop.f32.mrb[0].mxu1  ;;  %v195_v32 = vpop.f32.mrb[1].mxu0 }
 0x108   :  { %v283_v33 = vadd.f32 %v282_v31, %v97_v28  ;;  %v284_v34 = vpop.f32.mrb[1].mxu1  ;;  %v196_v38 = vadd.f32 %v195_v32, %v97_v28  ;;  %v2170_v31 = vrot.slane %v71_v18, %v2121_v13 }
 0x109   :  { %v1982_v35 = vmax.f32 %v194_v30, 0.0  ;;  %v285_v36 = vadd.f32 %v284_v34, %v97_v28  ;;  %v72_v28 = vld [vmem:[%s2854_s0 + $0x14] sm:$0xf]  ;;  %v2167_v30 = vrot.slane %v71_v18, %v2119_v12  ;;  %v2177_v34 = vrot.slane %v71_v18, %v2087_v53 }
 0x10a   :  { %v1984_v37 = vmax.f32 %v283_v33, 0.0  ;;  %v1996_v40 = vmax.f32 %v196_v38, 0.0  ;;  %v2174_v33 = vrot.slane %v71_v18, %v2117_v10  ;;  %v73_v38 = vld [vmem:[%s2854_s0 + $0x18] sm:$0xf]  ;;  %v2188_v43 = vrot.slane %v72_v28, %v2117_v10 }
 0x10b   :  { %321 = vrot.lane.b32.xlu0 %v1982_v35, %s1899_s27  ;;  %v1990_v39 = vmax.f32 %v285_v36, 0.0  ;;  %2873 = vst [vmem:[#allocation11_spill] sm:$0xff] %v2177_v34  ;;  %v2197_v49 = vrot.slane %v72_v28, %v2121_v13 }
 0x10c   :  { %325 = vrot.lane.b32.xlu1 %v1984_v37, %s1899_s27 }
 0x10f   :  { %327 = vrot.lane.b32.xlu0 %v1990_v39, %s1899_s27 }
 0x110   :  { %361 = vrot.lane.b32.xlu1 %v1982_v35, %s1900_s28 }
 0x113   :  { %363 = vrot.lane.b32.xlu0 %v1996_v40, %s1900_s28 }
 0x114   :  { %365 = vrot.lane.b32.xlu1 %v1984_v37, %s1900_s28 }
 0x117   :  { %367 = vrot.lane.b32.xlu0 %v1990_v39, %s1900_s28 }
 0x118   :  { %399 = vrot.lane.b32.xlu1 %v1982_v35, %s1901_s29 }
 0x11b   :  { %401 = vrot.lane.b32.xlu0 %v1996_v40, %s1901_s29 }
 0x11c   :  { %403 = vrot.lane.b32.xlu1 %v1984_v37, %s1901_s29 }
 0x11f   :  { %405 = vrot.lane.b32.xlu0 %v1990_v39, %s1901_s29 }
 0x120   :  { %437 = vrot.lane.b32.xlu1 %v1982_v35, %s1902_s30 }
 0x123   :  { %439 = vrot.lane.b32.xlu0 %v1996_v40, %s1902_s30 }
 0x124   :  { %441 = vrot.lane.b32.xlu1 %v1984_v37, %s1902_s30 }
 0x127   :  { %443 = vrot.lane.b32.xlu0 %v1990_v39, %s1902_s30 }
 0x128   :  { %475 = vrot.lane.b32.xlu1 %v1982_v35, %s1903_s9 }
 0x12b   :  { %477 = vrot.lane.b32.xlu0 %v1996_v40, %s1903_s9 }
 0x12c   :  { %479 = vrot.lane.b32.xlu1 %v1984_v37, %s1903_s9 }
 0x12f   :  { %481 = vrot.lane.b32.xlu0 %v1990_v39, %s1903_s9 }
 0x130   :  { %513 = vrot.lane.b32.xlu1 %v1982_v35, %s1904_s10 }
 0x133   :  { %515 = vrot.lane.b32.xlu0 %v1996_v40, %s1904_s10 }
 0x134   :  { %323 = vrot.lane.b32.xlu1 %v1996_v40, %s1899_s27 }
 0x137   :  { %519 = vrot.lane.b32.xlu0 %v1990_v39, %s1904_s10 }
 0x138   :  { %517 = vrot.lane.b32.xlu1 %v1984_v37, %s1904_s10 }
 0x13b   :  { %553 = vrot.lane.b32.xlu0 %v1996_v40, %s1905_s17 }
 0x13c   :  { %551 = vrot.lane.b32.xlu1 %v1982_v35, %s1905_s17 }
 0x13f   :  { %557 = vrot.lane.b32.xlu0 %v1990_v39, %s1905_s17 }
 0x140   :  { %555 = vrot.lane.b32.xlu1 %v1984_v37, %s1905_s17 }
 0x143   :  { %591 = vrot.lane.b32.xlu0 %v1996_v40, %s1906_s2 }
 0x144   :  { %589 = vrot.lane.b32.xlu1 %v1982_v35, %s1906_s2 }
 0x147   :  { %595 = vrot.lane.b32.xlu0 %v1990_v39, %s1906_s2 }
 0x148   :  { %593 = vrot.lane.b32.xlu1 %v1984_v37, %s1906_s2 }
 0x14b   :  { %629 = vperm.xlu0 %1801, %v80_v44   ;;  %v2191_v44 = vrot.slane %v72_v28, %v2119_v12 }
 0x14c   :  { %101 = vperm.xlu1 %1802, %v77_v45  }
 0x17d   :  { %v2081_v47 = vpop.permute.xlu0 %321 }
 0x17e   :  { %v2083_v48 = vpop.permute.xlu1 %325 }
 0x181   :  { %v328_v51 = vpop.permute.xlu0 %327 }
 0x182   :  { %v362_v52 = vpop.permute.xlu1 %361  ;;  %v332_v60 = vsel %vm331_vm1, %v2083_v48, %v328_v51  ;;  %v335_v29 = vsel %vm331_vm1, %v328_v51, %v2081_v47  ;;  %v2200_v51 = vrot.slane %v72_v28, %v2087_v53 }
 0x183   :  { %v360_v1 = vmul.f32 %v2100_v58, %v332_v60  ;;  %v357_v46 = vmul.f32 %v2130_v16, %v335_v29  ;;  %v2215_v60 = vrot.slane %v73_v38, %v2117_v10 }
 0x185   :  { %v364_v55 = vpop.permute.xlu0 %363 }
 0x186   :  { %v366_v56 = vpop.permute.xlu1 %365  ;;  %v372_v42 = vsel %vm369_vm2, %v362_v52, %v364_v55 }
 0x187   :  { %v371_v41 = vsel %vm369_vm2, %v364_v55, %v366_v56 }
 0x189   :  { %v368_v61 = vpop.permute.xlu0 %367 }
 0x18a   :  { %v2109_v62 = vpop.permute.xlu1 %399  ;;  %v370_v63 = vsel %vm369_vm2, %v366_v56, %v368_v61  ;;  %v373_v22 = vsel %vm369_vm2, %v368_v61, %v362_v52  ;;  %v2204_v56 = vrot.slane %v2092_v54, %v2119_v12  ;;  %v396_v61 = vmul.f32 %v2139_v20, %v372_v42 }
 0x18b   :  { %v398_v2 = vmul.f32 %v2103_v59, %v370_v63  ;;  %v395_v32 = vmul.f32 %v2133_v17, %v373_v22  ;;  %v397_v63 = vmul.f32 %v2142_v21, %v371_v41 }
 0x18d   :  { %v402_v3 = vpop.permute.xlu0 %401  ;;  %v1688_v4 = vpack.c.bf16 %v398_v2, %v360_v1  ;;  %v1674_v1 = vpack.c.bf16 %v395_v32, %v357_v46 }
 0x18e   :  { %v404_v5 = vpop.permute.xlu1 %403  ;;  %v410_v54 = vsel %vm407_vm3, %v2109_v62, %v402_v3 }
 0x18f   :  { %1689 = vmatprep.subr.bf16.mxu1 %v1688_v4  ;;  %v2222_v4 = vrot.slane %v73_v38, %v2119_v12  ;;  %v409_v15 = vsel %vm407_vm3, %v402_v3, %v404_v5  ;;  %v434_v46 = vmul.f32 %v2148_v24, %v410_v54 }
 0x191   :  { %v2115_v6 = vpop.permute.xlu0 %405 }
 0x192   :  { %v438_v7 = vpop.permute.xlu1 %437  ;;  %v408_v18 = vsel %vm407_vm3, %v404_v5, %v2115_v6 }
 0x195   :  { %v440_v8 = vpop.permute.xlu0 %439 }
 0x196   :  { %v442_v9 = vpop.permute.xlu1 %441  ;;  %v448_v52 = vsel %vm445_vm4, %v438_v7, %v440_v8 }
 0x197   :  { %v447_v22 = vsel %vm445_vm4, %v440_v8, %v442_v9  ;;  %v472_v29 = vmul.f32 %v2167_v30, %v448_v52 }
 0x198   :  { %v473_v52 = vmul.f32 %v2170_v31, %v447_v22  ;;  %v435_v22 = vmul.f32 %v2151_v25, %v409_v15 }
 0x199   :  { %v444_v11 = vpop.permute.xlu0 %443 }
 0x19a   :  { %v2123_v14 = vpop.permute.xlu1 %475  ;;  %v446_v55 = vsel %vm445_vm4, %v442_v9, %v444_v11  ;;  %v449_v42 = vsel %vm445_vm4, %v444_v11, %v438_v7 }
 0x19b   :  { %v474_v32 = vmul.f32 %v2177_v34, %v446_v55 }
 0x19d   :  { %v478_v19 = vpop.permute.xlu0 %477 }
 0x19e   :  { %v480_v23 = vpop.permute.xlu1 %479  ;;  %v486_v55 = vsel %vm483_vm5, %v2123_v14, %v478_v19 }
 0x19f   :  { %v485_v7 = vsel %vm483_vm5, %v478_v19, %v480_v23 }
 0x1a0   :  { %v510_v34 = vmul.f32 %v2191_v44, %v485_v7 }
 0x1a1   :  { %v482_v36 = vpop.permute.xlu0 %481 }
 0x1a2   :  { %v2193_v45 = vpop.permute.xlu1 %513  ;;  %v487_v5 = vsel %vm483_vm5, %v482_v36, %v2123_v14  ;;  %v1676_v14 = vpack.c.bf16 %v472_v29, %v434_v46  ;;  %v2282_v29 = vrot.slane %v74_v0, %v2117_v10 }
 0x1a5   :  { %v2219_v2 = vpop.permute.xlu0 %515 }
 0x1a6   :  { %v324_v28 = vpop.permute.xlu1 %323 }
 0x1a7   :  { %v333_v41 = vsel %vm331_vm1, %v324_v28, %v2083_v48  ;;  %v334_v3 = vsel %vm331_vm1, %v2081_v47, %v324_v28  ;;  %v411_v48 = vsel %vm407_vm3, %v2115_v6, %v2109_v62  ;;  %v436_v47 = vmul.f32 %v2157_v27, %v408_v18 }
 0x1a8   :  { %v358_v8 = vmul.f32 %v2204_v56, %v334_v3  ;;  %v359_v9 = vmul.f32 %v2212_v57, %v333_v41  ;;  %v471_v3 = vmul.f32 %v2174_v33, %v449_v42  ;;  %v484_v62 = vsel %vm483_vm5, %v480_v23, %v482_v36 }
 0x1a9   :  { %v520_v11 = vpop.permute.xlu0 %519  ;;  %v512_v6 = vmul.f32 %v2200_v51, %v487_v5  ;;  %v1692_v18 = vpack.c.bf16 %v474_v32, %v436_v47  ;;  %v433_v19 = vmul.f32 %v2154_v26, %v411_v48  ;;  %v509_v23 = vmul.f32 %v2188_v43, %v486_v55 }
 0x1aa   :  { %v1690_v28 = vpack.c.bf16 %v397_v63, %v359_v9  ;;  %v518_v41 = vpop.permute.xlu1 %517  ;;  %v1672_v54 = vpack.c.bf16 %v396_v61, %v358_v8  ;;  %v2274_v36 = vrot.slane %v73_v38, %v2121_v13  ;;  %v1694_v63 = vpack.c.bf16 %v473_v52, %v435_v22 }
 0x1ab   :  { %v511_v15 = vmul.f32 %v2197_v49, %v484_v62  ;;  %v2279_v32 = vrot.slane %v73_v38, %v2087_v53  ;;  %v1678_v5 = vpack.c.bf16 %v471_v3, %v433_v19  ;;  %v1696_v8 = vpack.c.bf16 %v512_v6, %v1990_v39 }
 0x1ac   :  { %1673 = vmatprep.subr.bf16.mxu0 %v1672_v54  ;;  %1691 = vmatpush1.bf16.msra.mxu1 %v1690_v28  ;;  %v2289_v9 = vrot.slane %v74_v0, %v2087_v53  ;;  %v2294_v38 = vrot.slane %v74_v0, %v2119_v12  ;;  %v1680_v48 = vpack.c.bf16 %v510_v34, %v1996_v40 }
 0x1ad   :  { %1675 = vmatpush1.bf16.msra.mxu0 %v1674_v1  ;;  %1693 = vmatprep.subr.bf16.mxu1 %v1692_v18  ;;  %v554_v61 = vpop.permute.xlu0 %553  ;;  %v525_v1 = vsel %vm521_vm6, %v520_v11, %v2193_v45  ;;  %v2298_v47 = vrot.slane %v74_v0, %v2121_v13  ;;  %v1682_v7 = vpack.c.bf16 %v509_v23, %v1982_v35  ;;  %v75_v23 = vld [vmem:[%s2854_s0 + $0x20] sm:$0xf] }
 0x1ae   :  { %v552_v42 = vpop.permute.xlu1 %551  ;;  %1677 = vmatprep.subr.bf16.mxu0 %v1676_v14  ;;  %v523_v39 = vsel %vm521_vm6, %v2219_v2, %v518_v41  ;;  %v522_v52 = vsel %vm521_vm6, %v518_v41, %v520_v11  ;;  %v1698_v28 = vpack.c.bf16 %v511_v15, %v1984_v37  ;;  %v524_v0 = vsel %vm521_vm6, %v2193_v45, %v2219_v2 }
 0x1af   :  { %v562_v46 = vsel %vm559_vm7, %v552_v42, %v554_v61  ;;  %v550_v40 = vmul.f32 %v2279_v32, %v525_v1  ;;  %v548_v3 = vmul.f32 %v2222_v4, %v523_v39  ;;  %v549_v45 = vmul.f32 %v2274_v36, %v522_v52  ;;  %v87_v52 = vld [vmem:[#allocation5] sm:$0xff] }
 0x1b0   :  { %1695 = vmatpush1.bf16.msra.mxu1 %v1694_v63  ;;  %v585_v54 = vmul.f32 %v2282_v29, %v562_v46  ;;  %v547_v6 = vmul.f32 %v2215_v60, %v524_v0  ;;  %v2330_v15 = vrot.slane %v75_v23, %v2087_v53  ;;  %v2339_v1 = vrot.slane %v75_v23, %v2117_v10  ;;  %v199_v0 = vpop.f32.mrb[2].mxu0 }
 0x1b1   :  { %1679 = vmatpush1.bf16.msra.mxu0 %v1678_v5  ;;  %1697 = vmatprep.subr.bf16.mxu1 %v1696_v8  ;;  %v558_v55 = vpop.permute.xlu0 %557  ;;  %v2336_v5 = vrot.slane %v75_v23, %v2121_v13 }
 0x1b2   :  { %v556_v35 = vpop.permute.xlu1 %555  ;;  %1681 = vmatprep.subr.bf16.mxu0 %v1680_v48  ;;  %v563_v34 = vsel %vm559_vm7, %v558_v55, %v552_v42  ;;  %v1686_v63 = vpack.c.bf16 %v585_v54, %v547_v6  ;;  %v2333_v42 = vrot.slane %v75_v23, %v2119_v12 }
 0x1b3   :  { %v561_v11 = vsel %vm559_vm7, %v554_v61, %v556_v35  ;;  %v560_v37 = vsel %vm559_vm7, %v556_v35, %v558_v55  ;;  %v588_v41 = vmul.f32 %v2289_v9, %v563_v34  ;;  %v288_v35 = vpop.f32.mrb[2].mxu1 }
 0x1b4   :  { %v586_v2 = vmul.f32 %v2294_v38, %v561_v11  ;;  %v587_v62 = vmul.f32 %v2298_v47, %v560_v37  ;;  %1699 = vmatpush1.bf16.msra.mxu1 %v1698_v28  ;;  %v2874_v28 = vmov 0.0   ;;  %v290_v34 = vpop.f32.mrb[3].mxu1 }
 0x1b5   :  { %1683 = vmatpush1.bf16.msra.mxu0 %v1682_v7  ;;  %v592_v18 = vpop.permute.xlu0 %591  ;;  %v1700_v22 = vpack.c.bf16 %v588_v41, %v550_v40  ;;  %v201_v40 = vpop.f32.mrb[3].mxu0 }
 0x1b6   :  { %v1702_v14 = vpack.c.bf16 %v587_v62, %v549_v45  ;;  %v590_v19 = vpop.permute.xlu1 %589  ;;  %v1684_v61 = vpack.c.bf16 %v586_v2, %v548_v3  ;;  %v2357_v54 = vpop.f32.mrb[4].mxu0 }
 0x1b7   :  { %1701 = vmatprep.subr.bf16.mxu1 %v1700_v22  ;;  %v600_v46 = vsel %vm597_vm8, %v590_v19, %v592_v18  ;;  %v2359_v11 = vpop.f32.mrb[5].mxu0  ;;  %v2361_v37 = vpop.f32.mrb[4].mxu1 }
 0x1b8   :  { %1685 = vmatprep.subr.bf16.mxu0 %v1684_v61  ;;  %1703 = vmatpush1.bf16.msra.mxu1 %v1702_v14  ;;  %v623_v55 = vmul.f32 %v2339_v1, %v600_v46  ;;  %v2363_v41 = vpop.f32.mrb[5].mxu1  ;;  %v2365_v3 = vpop.f32.mrb[6].mxu0 }
 0x1b9   :  { %1687 = vmatpush1.bf16.msra.mxu0 %v1686_v63  ;;  %v596_v8 = vpop.permute.xlu0 %595  ;;  %2875 = vst [vmem:[#allocation12_spill] sm:$0xff] %v2365_v3  ;;  %v2367_v45 = vpop.f32.mrb[7].mxu0 }
 0x1ba   :  { %v594_v48 = vpop.permute.xlu1 %593  ;;  %v601_v53 = vsel %vm597_vm8, %v596_v8, %v590_v19  ;;  %2876 = vst [vmem:[#allocation13_spill] sm:$0xff] %v2367_v45  ;;  %v2369_v2 = vpop.f32.mrb[6].mxu1 }
 0x1bb   :  { %v599_v7 = vsel %vm597_vm8, %v592_v18, %v594_v48  ;;  %v598_v12 = vsel %vm597_vm8, %v594_v48, %v596_v8  ;;  %v626_v13 = vmul.f32 %v2330_v15, %v601_v53  ;;  %2877 = vst [vmem:[#allocation14_spill] sm:$0xff] %v2369_v2  ;;  %v2371_v62 = vpop.f32.mrb[7].mxu1 }
 0x1bc   :  { %v624_v10 = vmul.f32 %v2333_v42, %v599_v7  ;;  %v625_v39 = vmul.f32 %v2336_v5, %v598_v12  ;;  %2878 = vst [vmem:[#allocation15_spill] sm:$0xff] %v2371_v62 }
 0x1bd   :  { %723 = vmatprep.subr.mxu1 %v626_v13 }
 0x1be   :  { %652 = vmatprep.subr.mxu0 %v624_v10  ;;  %724 = vmatpush1.msra.mxu1 %v625_v39 }
 0x1bf   :  { %653 = vmatpush1.msra.mxu0 %v623_v55  ;;  %1643 = vmatmul.mubr.msk.f32.vlgmr.msra.gmra.mrb[8].mxu1 %vm632_vm9, %v87_v52 }
 0x1c0   :  { %1642 = vmatmul.mubr.msk.f32.vlgmr.msra.gmra.mrb[8].mxu0 %vm632_vm9, %v87_v52  ;;  %1057 = vmatprep.mubr.f32.mxu1 %v2874_v28 }
 0x1c1   :  { %986 = vmatprep.mubr.f32.mxu0 %v2874_v28 }
 0x1ca   :  { %v630_v18 = vpop.permute.xlu0 %629 }
 0x1cb   :  { %v102_v6 = vpop.permute.xlu1 %101 }
 0x1cc   :  { %v200_v22 = vadd.f32 %v199_v0, %v102_v6  ;;  %v202_v23 = vadd.f32 %v201_v40, %v102_v6  ;;  %v289_v7 = vadd.f32 %v288_v35, %v102_v6  ;;  %v291_v10 = vadd.f32 %v290_v34, %v102_v6 }
 0x1ce   :  { %v309_v12 = vmax.f32 %v200_v22, 0.0  ;;  %v310_v39 = vmax.f32 %v202_v23, 0.0  ;;  %v311_v35 = vmax.f32 %v289_v7, 0.0  ;;  %v312_v34 = vmax.f32 %v291_v10, 0.0 }
 0x292   :  { %v773_v14 = vpop.f32.mrb[8].mxu1 }
 0x293   :  { %v702_v19 = vpop.f32.mrb[8].mxu0  ;;  %v775_v61 = vpop.f32.mrb[9].mxu1  ;;  %v2375_v8 = vadd.f32 %v773_v14, %v630_v18  ;;  %v78_v14 = vld [vmem:[%s2859_s5 + $0x10] sm:$0xff] }
 0x294   :  { %v2373_v63 = vadd.f32 %v702_v19, %v630_v18  ;;  %v704_v46 = vpop.f32.mrb[9].mxu0  ;;  %v2379_v53 = vadd.f32 %v775_v61, %v630_v18  ;;  %v81_v19 = vld [vmem:[%s2859_s5 + $0x28] sm:$0xff] }
 0x295   :  { %2879 = vst [vmem:[#allocation16_spill] sm:$0xff] %v2375_v8  ;;  %v2377_v48 = vadd.f32 %v704_v46, %v630_v18  ;;  %v2865_v0 = vmax.f32 %v2375_v8, 0.0 }
 0x296   :  { %2880 = vst [vmem:[#allocation17_spill] sm:$0xff] %v2379_v53  ;;  %v2867_v13 = vmax.f32 %v2373_v63, 0.0  ;;  %v2866_v18 = vmax.f32 %v2379_v53, 0.0 }
 0x297   :  { %v2868_v52 = vmax.f32 %v2377_v48, 0.0  ;;  %v2399_v6 = vadd.f32 %v2865_v0, %v311_v35 }
 0x298   :  { %v2385_v55 = vadd.f32 %v2867_v13, %v309_v12  ;;  %v2403_v22 = vadd.f32 %v2866_v18, %v312_v34 }
 0x299   :  { %v2390_v40 = vadd.f32 %v2868_v52, %v310_v39 }
 0x29a   :  { %786 = vrot.lane.b32.xlu1 %v2385_v55, %s1899_s27 }
 0x29b   :  { %788 = vrot.lane.b32.xlu0 %v2390_v40, %s1899_s27 }
 0x29e   :  { %790 = vrot.lane.b32.xlu1 %v2399_v6, %s1899_s27 }
 0x29f   :  { %792 = vrot.lane.b32.xlu0 %v2403_v22, %s1899_s27 }
 0x2a2   :  { %802 = vrot.lane.b32.xlu1 %v2385_v55, %s1900_s28 }
 0x2a3   :  { %804 = vrot.lane.b32.xlu0 %v2390_v40, %s1900_s28 }
 0x2a6   :  { %806 = vrot.lane.b32.xlu1 %v2399_v6, %s1900_s28 }
 0x2a7   :  { %808 = vrot.lane.b32.xlu0 %v2403_v22, %s1900_s28 }
 0x2aa   :  { %818 = vrot.lane.b32.xlu1 %v2385_v55, %s1901_s29 }
 0x2ab   :  { %820 = vrot.lane.b32.xlu0 %v2390_v40, %s1901_s29 }
 0x2ae   :  { %822 = vrot.lane.b32.xlu1 %v2399_v6, %s1901_s29 }
 0x2af   :  { %824 = vrot.lane.b32.xlu0 %v2403_v22, %s1901_s29 }
 0x2b2   :  { %834 = vrot.lane.b32.xlu1 %v2385_v55, %s1902_s30 }
 0x2b3   :  { %836 = vrot.lane.b32.xlu0 %v2390_v40, %s1902_s30 }
 0x2b6   :  { %838 = vrot.lane.b32.xlu1 %v2399_v6, %s1902_s30 }
 0x2b7   :  { %840 = vrot.lane.b32.xlu0 %v2403_v22, %s1902_s30 }
 0x2ba   :  { %850 = vrot.lane.b32.xlu1 %v2385_v55, %s1903_s9 }
 0x2bb   :  { %852 = vrot.lane.b32.xlu0 %v2390_v40, %s1903_s9 }
 0x2be   :  { %854 = vrot.lane.b32.xlu1 %v2399_v6, %s1903_s9 }
 0x2bf   :  { %856 = vrot.lane.b32.xlu0 %v2403_v22, %s1903_s9 }
 0x2c2   :  { %866 = vrot.lane.b32.xlu1 %v2385_v55, %s1904_s10 }
 0x2c3   :  { %868 = vrot.lane.b32.xlu0 %v2390_v40, %s1904_s10 }
 0x2c6   :  { %870 = vrot.lane.b32.xlu1 %v2399_v6, %s1904_s10 }
 0x2c7   :  { %872 = vrot.lane.b32.xlu0 %v2403_v22, %s1904_s10 }
 0x2ca   :  { %882 = vrot.lane.b32.xlu1 %v2385_v55, %s1905_s17 }
 0x2cb   :  { %884 = vrot.lane.b32.xlu0 %v2390_v40, %s1905_s17 }
 0x2ce   :  { %886 = vrot.lane.b32.xlu1 %v2399_v6, %s1905_s17 }
 0x2cf   :  { %888 = vrot.lane.b32.xlu0 %v2403_v22, %s1905_s17 }
 0x2d2   :  { %898 = vrot.lane.b32.xlu1 %v2385_v55, %s1906_s2 }
 0x2d3   :  { %900 = vrot.lane.b32.xlu0 %v2390_v40, %s1906_s2 }
 0x2d6   :  { %902 = vrot.lane.b32.xlu1 %v2399_v6, %s1906_s2 }
 0x2d7   :  { %904 = vrot.lane.b32.xlu0 %v2403_v22, %s1906_s2 }
 0x2da   :  { %106 = vperm.xlu1 %1802, %v78_v14  }
 0x2db   :  { %916 = vperm.xlu0 %1801, %v81_v19  }
 0x30c   :  { %v787_v23 = vpop.permute.xlu1 %786 }
 0x30d   :  { %v789_v61 = vpop.permute.xlu0 %788 }
 0x30e   :  { %v796_v12 = vsel %vm331_vm1, %v787_v23, %v789_v61 }
 0x30f   :  { %v799_v34 = vmul.f32 %v796_v12, %v2204_v56 }
 0x310   :  { %v791_v46 = vpop.permute.xlu1 %790 }
 0x311   :  { %v793_v7 = vpop.permute.xlu0 %792  ;;  %v795_v13 = vsel %vm331_vm1, %v789_v61, %v791_v46 }
 0x312   :  { %v794_v14 = vsel %vm331_vm1, %v791_v46, %v793_v7  ;;  %v797_v19 = vsel %vm331_vm1, %v793_v7, %v787_v23  ;;  %v800_v46 = vmul.f32 %v795_v13, %v2212_v57 }
 0x313   :  { %v798_v3 = vmul.f32 %v797_v19, %v2130_v16  ;;  %v801_v23 = vmul.f32 %v794_v14, %v2100_v58 }
 0x314   :  { %v803_v10 = vpop.permute.xlu1 %802 }
 0x315   :  { %v805_v39 = vpop.permute.xlu0 %804 }
 0x316   :  { %v812_v35 = vsel %vm369_vm2, %v803_v10, %v805_v39 }
 0x317   :  { %v815_v0 = vmul.f32 %v812_v35, %v2139_v20 }
 0x318   :  { %v807_v18 = vpop.permute.xlu1 %806 }
 0x319   :  { %v811_v52 = vsel %vm369_vm2, %v805_v39, %v807_v18  ;;  %v809_v62 = vpop.permute.xlu0 %808  ;;  %v1704_v2 = vpack.c.bf16 %v815_v0, %v799_v34 }
 0x31a   :  { %v816_v45 = vmul.f32 %v811_v52, %v2142_v21  ;;  %v810_v12 = vsel %vm369_vm2, %v807_v18, %v809_v62  ;;  %v813_v35 = vsel %vm369_vm2, %v809_v62, %v803_v10 }
 0x31b   :  { %v814_v7 = vmul.f32 %v813_v35, %v2133_v17  ;;  %v817_v61 = vmul.f32 %v810_v12, %v2103_v59  ;;  %1705 = vmatprep.subr.bf16.mxu0 %v1704_v2 }
 0x31c   :  { %v819_v0 = vpop.permute.xlu1 %818  ;;  %v1722_v8 = vpack.c.bf16 %v816_v45, %v800_v46 }
 0x31d   :  { %v1706_v39 = vpack.c.bf16 %v814_v7, %v798_v3  ;;  %v821_v52 = vpop.permute.xlu0 %820  ;;  %v1720_v34 = vpack.c.bf16 %v817_v61, %v801_v23 }
 0x31e   :  { %v828_v10 = vsel %vm407_vm3, %v819_v0, %v821_v52 }
 0x31f   :  { %1707 = vmatpush1.bf16.msra.mxu0 %v1706_v39  ;;  %1721 = vmatprep.subr.bf16.mxu1 %v1720_v34  ;;  %v831_v13 = vmul.f32 %v828_v10, %v2148_v24 }
 0x320   :  { %1723 = vmatpush1.bf16.msra.mxu1 %v1722_v8  ;;  %v823_v62 = vpop.permute.xlu1 %822 }
 0x321   :  { %v825_v18 = vpop.permute.xlu0 %824  ;;  %v827_v35 = vsel %vm407_vm3, %v821_v52, %v823_v62  ;;  %v2881_v52 = vld [vmem:[#allocation11_spill] sm:$0xff] }
 0x322   :  { %v826_v45 = vsel %vm407_vm3, %v823_v62, %v825_v18  ;;  %v829_v8 = vsel %vm407_vm3, %v825_v18, %v819_v0 }
 0x323   :  { %v830_v10 = vmul.f32 %v829_v8, %v2154_v26  ;;  %v833_v0 = vmul.f32 %v826_v45, %v2157_v27 }
 0x324   :  { %v835_v14 = vpop.permute.xlu1 %834 }
 0x325   :  { %v837_v19 = vpop.permute.xlu0 %836 }
 0x326   :  { %v844_v2 = vsel %vm445_vm4, %v835_v14, %v837_v19 }
 0x327   :  { %v847_v3 = vmul.f32 %v844_v2, %v2167_v30 }
 0x328   :  { %v839_v12 = vpop.permute.xlu1 %838 }
 0x329   :  { %v843_v23 = vsel %vm445_vm4, %v837_v19, %v839_v12  ;;  %v841_v7 = vpop.permute.xlu0 %840  ;;  %v1708_v61 = vpack.c.bf16 %v847_v3, %v831_v13  ;;  %v832_v19 = vmul.f32 %v827_v35, %v2151_v25 }
 0x32a   :  { %v848_v46 = vmul.f32 %v843_v23, %v2170_v31  ;;  %v842_v39 = vsel %vm445_vm4, %v839_v12, %v841_v7  ;;  %v845_v34 = vsel %vm445_vm4, %v841_v7, %v835_v14 }
 0x32b   :  { %v846_v18 = vmul.f32 %v845_v34, %v2174_v33  ;;  %v849_v62 = vmul.f32 %v842_v39, %v2881_v52  ;;  %1709 = vmatprep.subr.bf16.mxu0 %v1708_v61 }
 0x32c   :  { %v851_v2 = vpop.permute.xlu1 %850  ;;  %v1726_v53 = vpack.c.bf16 %v848_v46, %v832_v19 }
 0x32d   :  { %v1710_v13 = vpack.c.bf16 %v846_v18, %v830_v10  ;;  %v853_v3 = vpop.permute.xlu0 %852  ;;  %v1724_v23 = vpack.c.bf16 %v849_v62, %v833_v0 }
 0x32e   :  { %v860_v12 = vsel %vm483_vm5, %v851_v2, %v853_v3 }
 0x32f   :  { %1711 = vmatpush1.bf16.msra.mxu0 %v1710_v13  ;;  %1725 = vmatprep.subr.bf16.mxu1 %v1724_v23  ;;  %v862_v45 = vmul.f32 %v860_v12, %v2188_v43 }
 0x330   :  { %1727 = vmatpush1.bf16.msra.mxu1 %v1726_v53  ;;  %v855_v14 = vpop.permute.xlu1 %854 }
 0x331   :  { %v859_v8 = vsel %vm483_vm5, %v853_v3, %v855_v14  ;;  %v857_v7 = vpop.permute.xlu0 %856  ;;  %v1714_v0 = vpack.c.bf16 %v862_v45, %v2385_v55 }
 0x332   :  { %v863_v35 = vmul.f32 %v859_v8, %v2191_v44  ;;  %v858_v61 = vsel %vm483_vm5, %v855_v14, %v857_v7  ;;  %v861_v46 = vsel %vm483_vm5, %v857_v7, %v851_v2 }
 0x333   :  { %v864_v39 = vmul.f32 %v858_v61, %v2197_v49  ;;  %v865_v34 = vmul.f32 %v861_v46, %v2200_v51 }
 0x334   :  { %v867_v53 = vpop.permute.xlu1 %866  ;;  %v1712_v10 = vpack.c.bf16 %v863_v35, %v2390_v40 }
 0x335   :  { %v1730_v18 = vpack.c.bf16 %v864_v39, %v2399_v6  ;;  %v869_v62 = vpop.permute.xlu0 %868  ;;  %v1728_v19 = vpack.c.bf16 %v865_v34, %v2403_v22 }
 0x336   :  { %1713 = vmatprep.subr.bf16.mxu0 %v1712_v10  ;;  %v876_v12 = vsel %vm521_vm6, %v867_v53, %v869_v62 }
 0x337   :  { %1715 = vmatpush1.bf16.msra.mxu0 %v1714_v0  ;;  %1729 = vmatprep.subr.bf16.mxu1 %v1728_v19  ;;  %v878_v45 = vmul.f32 %v876_v12, %v2215_v60 }
 0x338   :  { %1731 = vmatpush1.bf16.msra.mxu1 %v1730_v18  ;;  %v871_v13 = vpop.permute.xlu1 %870 }
 0x339   :  { %v873_v2 = vpop.permute.xlu0 %872  ;;  %v875_v55 = vsel %vm521_vm6, %v869_v62, %v871_v13 }
 0x33a   :  { %v874_v6 = vsel %vm521_vm6, %v871_v13, %v873_v2  ;;  %v877_v22 = vsel %vm521_vm6, %v873_v2, %v867_v53  ;;  %v879_v61 = vmul.f32 %v875_v55, %v2222_v4 }
 0x33b   :  { %v880_v53 = vmul.f32 %v874_v6, %v2274_v36  ;;  %v881_v10 = vmul.f32 %v877_v22, %v2279_v32 }
 0x33c   :  { %v883_v3 = vpop.permute.xlu1 %882 }
 0x33d   :  { %v885_v23 = vpop.permute.xlu0 %884 }
 0x33e   :  { %v892_v40 = vsel %vm559_vm7, %v883_v3, %v885_v23 }
 0x33f   :  { %v894_v8 = vmul.f32 %v892_v40, %v2282_v29 }
 0x340   :  { %v887_v14 = vpop.permute.xlu1 %886 }
 0x341   :  { %v891_v7 = vsel %vm559_vm7, %v885_v23, %v887_v14  ;;  %v889_v35 = vpop.permute.xlu0 %888  ;;  %v1718_v13 = vpack.c.bf16 %v894_v8, %v878_v45 }
 0x342   :  { %v895_v46 = vmul.f32 %v891_v7, %v2294_v38  ;;  %v890_v39 = vsel %vm559_vm7, %v887_v14, %v889_v35  ;;  %v893_v34 = vsel %vm559_vm7, %v889_v35, %v883_v3 }
 0x343   :  { %v896_v0 = vmul.f32 %v890_v39, %v2298_v47  ;;  %v897_v18 = vmul.f32 %v893_v34, %v2289_v9 }
 0x344   :  { %v899_v62 = vpop.permute.xlu1 %898  ;;  %v1716_v19 = vpack.c.bf16 %v895_v46, %v879_v61  ;;  %v88_v61 = vld [vmem:[#allocation5 + $0x8] sm:$0xff] }
 0x345   :  { %v1734_v2 = vpack.c.bf16 %v896_v0, %v880_v53  ;;  %v901_v23 = vpop.permute.xlu0 %900  ;;  %v1732_v12 = vpack.c.bf16 %v897_v18, %v881_v10 }
 0x346   :  { %1717 = vmatprep.subr.bf16.mxu0 %v1716_v19  ;;  %v908_v3 = vsel %vm597_vm8, %v899_v62, %v901_v23 }
 0x347   :  { %1719 = vmatpush1.bf16.msra.mxu0 %v1718_v13  ;;  %1733 = vmatprep.subr.bf16.mxu1 %v1732_v12  ;;  %v910_v8 = vmul.f32 %v908_v3, %v2339_v1 }
 0x348   :  { %1735 = vmatpush1.bf16.msra.mxu1 %v1734_v2  ;;  %v903_v40 = vpop.permute.xlu1 %902 }
 0x349   :  { %v907_v55 = vsel %vm597_vm8, %v901_v23, %v903_v40  ;;  %v905_v6 = vpop.permute.xlu0 %904 }
 0x34a   :  { %v911_v22 = vmul.f32 %v907_v55, %v2333_v42  ;;  %v906_v14 = vsel %vm597_vm8, %v903_v40, %v905_v6  ;;  %v909_v45 = vsel %vm597_vm8, %v905_v6, %v899_v62 }
 0x34b   :  { %v912_v7 = vmul.f32 %v906_v14, %v2336_v5  ;;  %v913_v35 = vmul.f32 %v909_v45, %v2330_v15 }
 0x34c   :  { %938 = vmatprep.subr.mxu0 %v911_v22 }
 0x34d   :  { %939 = vmatpush1.msra.mxu0 %v910_v8  ;;  %1009 = vmatprep.subr.mxu1 %v913_v35  ;;  %v79_v35 = vld [vmem:[%s2859_s5 + $0x18] sm:$0xff] }
 0x34e   :  { %1644 = vmatmul.mubr.msk.f32.vlgmr.msra.gmra.mrb[10].mxu0 %vm632_vm9, %v88_v61  ;;  %1010 = vmatpush1.msra.mxu1 %v912_v7 }
 0x34f   :  { %1645 = vmatmul.mubr.msk.f32.vlgmr.msra.gmra.mrb[10].mxu1 %vm632_vm9, %v88_v61  ;;  %1272 = vmatprep.mubr.f32.mxu0 %v2874_v28  ;;  %v82_v61 = vld [vmem:[%s2859_s5 + $0x30] sm:$0xff] }
 0x350   :  { %1343 = vmatprep.mubr.f32.mxu1 %v2874_v28 }
 0x359   :  { %v107_v46 = vpop.permute.xlu1 %106 }
 0x35a   :  { %v206_v39 = vadd.f32 %v2357_v54, %v107_v46  ;;  %v917_v34 = vpop.permute.xlu0 %916  ;;  %v208_v10 = vadd.f32 %v2359_v11, %v107_v46  ;;  %v295_v0 = vadd.f32 %v2361_v37, %v107_v46  ;;  %v297_v13 = vadd.f32 %v2363_v41, %v107_v46  ;;  %v83_v46 = vld [vmem:[%s2859_s5 + $0x38] sm:$0xff] }
 0x35c   :  { %v313_v3 = vmax.f32 %v206_v39, 0.0  ;;  %v314_v55 = vmax.f32 %v208_v10, 0.0  ;;  %v315_v37 = vmax.f32 %v295_v0, 0.0  ;;  %v316_v41 = vmax.f32 %v297_v13, 0.0  ;;  %v84_v39 = vld [vmem:[%s2859_s5 + $0x40] sm:$0xff] }
 0x421   :  { %v988_v53 = vpop.f32.mrb[10].mxu0 }
 0x422   :  { %v2578_v18 = vadd.f32 %v988_v53, %v917_v34  ;;  %v990_v62 = vpop.f32.mrb[11].mxu0  ;;  %v1059_v19 = vpop.f32.mrb[10].mxu1  ;;  %v86_v53 = vld [vmem:[%s2859_s5 + $0x50] sm:$0xff] }
 0x423   :  { %v2581_v2 = vadd.f32 %v990_v62, %v917_v34  ;;  %v2583_v23 = vadd.f32 %v1059_v19, %v917_v34  ;;  %v1061_v12 = vpop.f32.mrb[11].mxu1 }
 0x424   :  { %v1064_v54 = vmax.f32 %v2578_v18, 0.0  ;;  %v2586_v40 = vadd.f32 %v1061_v12, %v917_v34  ;;  %v85_v34 = vld [vmem:[%s2859_s5 + $0x48] sm:$0xff]  ;;  %v2890_v18 = vld [vmem:[#allocation12_spill] sm:$0xff] }
 0x425   :  { %v1065_v11 = vmax.f32 %v2581_v2, 0.0  ;;  %v2871_v6 = vmax.f32 %v2583_v23, 0.0  ;;  %v2889_v2 = vmax.f32 %v2583_v23, 0.0 }
 0x426   :  { %v2592_v22 = vadd.f32 %v1064_v54, %v313_v3  ;;  %v2872_v14 = vmax.f32 %v2586_v40, 0.0 }
 0x427   :  { %v2597_v45 = vadd.f32 %v1065_v11, %v314_v55  ;;  %v2601_v8 = vadd.f32 %v2871_v6, %v315_v37 }
 0x428   :  { %v2605_v7 = vadd.f32 %v2872_v14, %v316_v41  ;;  %1072 = vrot.lane.b32.xlu1 %v2592_v22, %s1899_s27 }
 0x429   :  { %1074 = vrot.lane.b32.xlu0 %v2597_v45, %s1899_s27 }
 0x42c   :  { %1076 = vrot.lane.b32.xlu1 %v2601_v8, %s1899_s27 }
 0x42d   :  { %1078 = vrot.lane.b32.xlu0 %v2605_v7, %s1899_s27 }
 0x430   :  { %1088 = vrot.lane.b32.xlu1 %v2592_v22, %s1900_s28 }
 0x431   :  { %1090 = vrot.lane.b32.xlu0 %v2597_v45, %s1900_s28 }
 0x434   :  { %1092 = vrot.lane.b32.xlu1 %v2601_v8, %s1900_s28 }
 0x435   :  { %1094 = vrot.lane.b32.xlu0 %v2605_v7, %s1900_s28 }
 0x438   :  { %1104 = vrot.lane.b32.xlu1 %v2592_v22, %s1901_s29 }
 0x439   :  { %1106 = vrot.lane.b32.xlu0 %v2597_v45, %s1901_s29 }
 0x43c   :  { %1108 = vrot.lane.b32.xlu1 %v2601_v8, %s1901_s29 }
 0x43d   :  { %1110 = vrot.lane.b32.xlu0 %v2605_v7, %s1901_s29 }
 0x440   :  { %1120 = vrot.lane.b32.xlu1 %v2592_v22, %s1902_s30 }
 0x441   :  { %1122 = vrot.lane.b32.xlu0 %v2597_v45, %s1902_s30 }
 0x444   :  { %1124 = vrot.lane.b32.xlu1 %v2601_v8, %s1902_s30 }
 0x445   :  { %1126 = vrot.lane.b32.xlu0 %v2605_v7, %s1902_s30 }
 0x448   :  { %1136 = vrot.lane.b32.xlu1 %v2592_v22, %s1903_s9 }
 0x449   :  { %1138 = vrot.lane.b32.xlu0 %v2597_v45, %s1903_s9 }
 0x44c   :  { %1140 = vrot.lane.b32.xlu1 %v2601_v8, %s1903_s9 }
 0x44d   :  { %1142 = vrot.lane.b32.xlu0 %v2605_v7, %s1903_s9 }
 0x450   :  { %1152 = vrot.lane.b32.xlu1 %v2592_v22, %s1904_s10 }
 0x451   :  { %1154 = vrot.lane.b32.xlu0 %v2597_v45, %s1904_s10 }
 0x454   :  { %1156 = vrot.lane.b32.xlu1 %v2601_v8, %s1904_s10 }
 0x455   :  { %1158 = vrot.lane.b32.xlu0 %v2605_v7, %s1904_s10 }
 0x458   :  { %1168 = vrot.lane.b32.xlu1 %v2592_v22, %s1905_s17 }
 0x459   :  { %1170 = vrot.lane.b32.xlu0 %v2597_v45, %s1905_s17 }
 0x45c   :  { %1172 = vrot.lane.b32.xlu1 %v2601_v8, %s1905_s17 }
 0x45d   :  { %1174 = vrot.lane.b32.xlu0 %v2605_v7, %s1905_s17 }
 0x460   :  { %1184 = vrot.lane.b32.xlu1 %v2592_v22, %s1906_s2 }
 0x461   :  { %1186 = vrot.lane.b32.xlu0 %v2597_v45, %s1906_s2 }
 0x464   :  { %1188 = vrot.lane.b32.xlu1 %v2601_v8, %s1906_s2 }
 0x465   :  { %1190 = vrot.lane.b32.xlu0 %v2605_v7, %s1906_s2 }
 0x468   :  { %111 = vperm.xlu1 %1802, %v79_v35  }
 0x469   :  { %1202 = vperm.xlu0 %1801, %v82_v61  }
 0x46c   :  { %1360 = vperm.xlu1 %1802, %v83_v46  }
 0x46d   :  { %1365 = vperm.xlu0 %1801, %v84_v39  }
 0x470   :  { %1370 = vperm.xlu1 %1802, %v85_v34  }
 0x471   :  { %1375 = vperm.xlu0 %1801, %v86_v53  }
 0x49a   :  { %v1073_v10 = vpop.permute.xlu1 %1072 }
 0x49b   :  { %v1075_v0 = vpop.permute.xlu0 %1074 }
 0x49c   :  { %v1082_v13 = vsel %vm331_vm1, %v1073_v10, %v1075_v0 }
 0x49d   :  { %v1085_v37 = vmul.f32 %v1082_v13, %v2204_v56 }
 0x49e   :  { %v1077_v62 = vpop.permute.xlu1 %1076 }
 0x49f   :  { %v1079_v19 = vpop.permute.xlu0 %1078  ;;  %v1081_v39 = vsel %vm331_vm1, %v1075_v0, %v1077_v62 }
 0x4a0   :  { %v1080_v35 = vsel %vm331_vm1, %v1077_v62, %v1079_v19  ;;  %v1083_v61 = vsel %vm331_vm1, %v1079_v19, %v1073_v10  ;;  %v1086_v62 = vmul.f32 %v1081_v39, %v2212_v57 }
 0x4a1   :  { %v1084_v13 = vmul.f32 %v1083_v61, %v2130_v16  ;;  %v1087_v10 = vmul.f32 %v1080_v35, %v2100_v58 }
 0x4a2   :  { %v1089_v12 = vpop.permute.xlu1 %1088 }
 0x4a3   :  { %v1091_v3 = vpop.permute.xlu0 %1090 }
 0x4a4   :  { %v1098_v55 = vsel %vm369_vm2, %v1089_v12, %v1091_v3 }
 0x4a5   :  { %v1101_v41 = vmul.f32 %v1098_v55, %v2139_v20 }
 0x4a6   :  { %v1093_v46 = vpop.permute.xlu1 %1092 }
 0x4a7   :  { %v1097_v34 = vsel %vm369_vm2, %v1091_v3, %v1093_v46  ;;  %v1095_v53 = vpop.permute.xlu0 %1094  ;;  %v1736_v6 = vpack.c.bf16 %v1101_v41, %v1085_v37 }
 0x4a8   :  { %v1102_v14 = vmul.f32 %v1097_v34, %v2142_v21  ;;  %v1096_v20 = vsel %vm369_vm2, %v1093_v46, %v1095_v53  ;;  %v1099_v56 = vsel %vm369_vm2, %v1095_v53, %v1089_v12 }
 0x4a9   :  { %v1100_v19 = vmul.f32 %v1099_v56, %v2133_v17  ;;  %v1103_v0 = vmul.f32 %v1096_v20, %v2103_v59  ;;  %1737 = vmatprep.subr.bf16.mxu0 %v1736_v6 }
 0x4aa   :  { %v1105_v3 = vpop.permute.xlu1 %1104  ;;  %v1754_v41 = vpack.c.bf16 %v1102_v14, %v1086_v62 }
 0x4ab   :  { %v1738_v55 = vpack.c.bf16 %v1100_v19, %v1084_v13  ;;  %v1107_v21 = vpop.permute.xlu0 %1106  ;;  %v1752_v37 = vpack.c.bf16 %v1103_v0, %v1087_v10 }
 0x4ac   :  { %v1114_v58 = vsel %vm407_vm3, %v1105_v3, %v1107_v21 }
 0x4ad   :  { %1739 = vmatpush1.bf16.msra.mxu0 %v1738_v55  ;;  %1753 = vmatprep.subr.bf16.mxu1 %v1752_v37  ;;  %v1117_v57 = vmul.f32 %v1114_v58, %v2148_v24 }
 0x4ae   :  { %1755 = vmatpush1.bf16.msra.mxu1 %v1754_v41  ;;  %v1109_v12 = vpop.permute.xlu1 %1108 }
 0x4af   :  { %v1111_v46 = vpop.permute.xlu0 %1110  ;;  %v1113_v39 = vsel %vm407_vm3, %v1107_v21, %v1109_v12 }
 0x4b0   :  { %v1112_v14 = vsel %vm407_vm3, %v1109_v12, %v1111_v46  ;;  %v1115_v35 = vsel %vm407_vm3, %v1111_v46, %v1105_v3  ;;  %v1118_v62 = vmul.f32 %v1113_v39, %v2151_v25 }
 0x4b1   :  { %v1116_v13 = vmul.f32 %v1115_v35, %v2154_v26  ;;  %v1119_v10 = vmul.f32 %v1112_v14, %v2157_v27 }
 0x4b2   :  { %v1121_v16 = vpop.permute.xlu1 %1120 }
 0x4b3   :  { %v1123_v17 = vpop.permute.xlu0 %1122 }
 0x4b4   :  { %v1130_v59 = vsel %vm445_vm4, %v1121_v16, %v1123_v17 }
 0x4b5   :  { %v1133_v6 = vmul.f32 %v1130_v59, %v2167_v30 }
 0x4b6   :  { %v1125_v61 = vpop.permute.xlu1 %1124 }
 0x4b7   :  { %v1129_v34 = vsel %vm445_vm4, %v1123_v17, %v1125_v61  ;;  %v1127_v53 = vpop.permute.xlu0 %1126  ;;  %v1740_v20 = vpack.c.bf16 %v1133_v6, %v1117_v57 }
 0x4b8   :  { %v1134_v56 = vmul.f32 %v1129_v34, %v2170_v31  ;;  %v1128_v24 = vsel %vm445_vm4, %v1125_v61, %v1127_v53  ;;  %v1131_v30 = vsel %vm445_vm4, %v1127_v53, %v1121_v16 }
 0x4b9   :  { %v1132_v19 = vmul.f32 %v1131_v30, %v2174_v33  ;;  %v1135_v0 = vmul.f32 %v1128_v24, %v2881_v52  ;;  %1741 = vmatprep.subr.bf16.mxu0 %v1740_v20 }
 0x4ba   :  { %v1137_v3 = vpop.permute.xlu1 %1136  ;;  %v1758_v37 = vpack.c.bf16 %v1134_v56, %v1118_v62 }
 0x4bb   :  { %v1742_v55 = vpack.c.bf16 %v1132_v19, %v1116_v13  ;;  %v1139_v31 = vpop.permute.xlu0 %1138  ;;  %v1756_v21 = vpack.c.bf16 %v1135_v0, %v1119_v10 }
 0x4bc   :  { %v1146_v41 = vsel %vm483_vm5, %v1137_v3, %v1139_v31 }
 0x4bd   :  { %1743 = vmatpush1.bf16.msra.mxu0 %v1742_v55  ;;  %1757 = vmatprep.subr.bf16.mxu1 %v1756_v21  ;;  %v1148_v27 = vmul.f32 %v1146_v41, %v2188_v43 }
 0x4be   :  { %1759 = vmatpush1.bf16.msra.mxu1 %v1758_v37  ;;  %v1141_v26 = vpop.permute.xlu1 %1140 }
 0x4bf   :  { %v1145_v33 = vsel %vm483_vm5, %v1139_v31, %v1141_v26  ;;  %v1143_v52 = vpop.permute.xlu0 %1142  ;;  %v1746_v43 = vpack.c.bf16 %v1148_v27, %v2592_v22 }
 0x4c0   :  { %v1149_v25 = vmul.f32 %v1145_v33, %v2191_v44  ;;  %v1144_v12 = vsel %vm483_vm5, %v1141_v26, %v1143_v52  ;;  %v1147_v46 = vsel %vm483_vm5, %v1143_v52, %v1137_v3  ;;  %v89_v52 = vld [vmem:[#allocation5 + $0x10] sm:$0xff] }
 0x4c1   :  { %v1150_v58 = vmul.f32 %v1144_v12, %v2197_v49  ;;  %v1151_v16 = vmul.f32 %v1147_v46, %v2200_v51  ;;  %v2884_v46 = vld [vmem:[#allocation17_spill] sm:$0xff] }
 0x4c2   :  { %v1153_v17 = vpop.permute.xlu1 %1152  ;;  %v1744_v59 = vpack.c.bf16 %v1149_v25, %v2597_v45  ;;  %v2882_v25 = vmax.f32 %v2377_v48, 0.0 }
 0x4c3   :  { %v1762_v57 = vpack.c.bf16 %v1150_v58, %v2601_v8  ;;  %v1155_v6 = vpop.permute.xlu0 %1154  ;;  %v1760_v44 = vpack.c.bf16 %v1151_v16, %v2605_v7 }
 0x4c4   :  { %1745 = vmatprep.subr.bf16.mxu0 %v1744_v59  ;;  %v1162_v51 = vsel %vm521_vm6, %v1153_v17, %v1155_v6  ;;  %v1768_v12 = vpack.c.bf16 %v1065_v11, %v2882_v25  ;;  %v1806_v25 = vld [vmem:[#allocation2 + $0x18] sm:$0xff] }
 0x4c5   :  { %1747 = vmatpush1.bf16.msra.mxu0 %v1746_v43  ;;  %1761 = vmatprep.subr.bf16.mxu1 %v1760_v44  ;;  %v1164_v34 = vmul.f32 %v1162_v51, %v2215_v60  ;;  %v2892_v43 = vld [vmem:[#allocation14_spill] sm:$0xff] }
 0x4c6   :  { %1763 = vmatpush1.bf16.msra.mxu1 %v1762_v57  ;;  %v1157_v14 = vpop.permute.xlu1 %1156 }
 0x4c7   :  { %v1159_v35 = vpop.permute.xlu0 %1158  ;;  %v1161_v22 = vsel %vm521_vm6, %v1155_v6, %v1157_v14 }
 0x4c8   :  { %v1160_v8 = vsel %vm521_vm6, %v1157_v14, %v1159_v35  ;;  %v1163_v7 = vsel %vm521_vm6, %v1159_v35, %v1153_v17  ;;  %v1165_v24 = vmul.f32 %v1161_v22, %v2222_v4  ;;  %v2891_v17 = vld [vmem:[#allocation13_spill] sm:$0xff]  ;;  %v2893_v14 = vld [vmem:[#allocation15_spill] sm:$0xff] }
 0x4c9   :  { %v1166_v19 = vmul.f32 %v1160_v8, %v2274_v36  ;;  %v1167_v60 = vmul.f32 %v1163_v7, %v2279_v32 }
 0x4ca   :  { %v1169_v61 = vpop.permute.xlu1 %1168 }
 0x4cb   :  { %v1171_v49 = vpop.permute.xlu0 %1170 }
 0x4cc   :  { %v1178_v45 = vsel %vm559_vm7, %v1169_v61, %v1171_v49 }
 0x4cd   :  { %v1180_v53 = vmul.f32 %v1178_v45, %v2282_v29 }
 0x4ce   :  { %v1173_v39 = vpop.permute.xlu1 %1172 }
 0x4cf   :  { %v1177_v20 = vsel %vm559_vm7, %v1171_v49, %v1173_v39  ;;  %v1175_v56 = vpop.permute.xlu0 %1174  ;;  %v1750_v55 = vpack.c.bf16 %v1180_v53, %v1164_v34 }
 0x4d0   :  { %v1181_v30 = vmul.f32 %v1177_v20, %v2294_v38  ;;  %v1176_v13 = vsel %vm559_vm7, %v1173_v39, %v1175_v56  ;;  %v1179_v10 = vsel %vm559_vm7, %v1175_v56, %v1169_v61 }
 0x4d1   :  { %v1182_v29 = vmul.f32 %v1176_v13, %v2298_v47  ;;  %v1183_v0 = vmul.f32 %v1179_v10, %v2289_v9 }
 0x4d2   :  { %v1185_v62 = vpop.permute.xlu1 %1184  ;;  %v1748_v3 = vpack.c.bf16 %v1181_v30, %v1165_v24 }
 0x4d3   :  { %v1766_v4 = vpack.c.bf16 %v1182_v29, %v1166_v19  ;;  %v1187_v31 = vpop.permute.xlu0 %1186  ;;  %v1764_v38 = vpack.c.bf16 %v1183_v0, %v1167_v60  ;;  %v1354_v19 = vld [vmem:[%s2858_s4] sm:$0xff]  ;;  %v1355_v60 = vld [vmem:[%s2858_s4 + $0x8] sm:$0xff]  ;;  %v1356_v29 = vld [vmem:[%s2858_s4 + $0x10] sm:$0xff] }
 0x4d4   :  { %1749 = vmatprep.subr.bf16.mxu0 %v1748_v3  ;;  %v1194_v21 = vsel %vm597_vm8, %v1185_v62, %v1187_v31  ;;  %v1357_v0 = vld [vmem:[%s2858_s4 + $0x18] sm:$0xff]  ;;  %s1907_s4 = smov [#allocation7]  }
 0x4d5   :  { %1751 = vmatpush1.bf16.msra.mxu0 %v1750_v55  ;;  %1765 = vmatprep.subr.bf16.mxu1 %v1764_v38  ;;  %v1196_v26 = vmul.f32 %v1194_v21, %v2339_v1  ;;  %v2885_v1 = vmax.f32 %v2884_v46, 0.0  ;;  %s1621_s18 = sshll.u32 %s1907_s4, 4  ;;  %s1622_s18 = int_to_ptr.vmem [resolvable:$true] %s1621_s18 }
 0x4d6   :  { %1767 = vmatpush1.bf16.msra.mxu1 %v1766_v4  ;;  %v1189_v36 = vpop.permute.xlu1 %1188  ;;  %s1863_s19 = scalar_lea.vmem %s1622_s18, 2048  ;;  %p1868_p3 = scmp.lt.s32.totalorder %s1622_s18, %s1622_s18 }
 0x4d7   :  { %v1193_v32 = vsel %vm597_vm8, %v1187_v31, %v1189_v36  ;;  %v1191_v47 = vpop.permute.xlu0 %1190  ;;  %p1864_p2 = scmp.ne.s32.totalorder %s1622_s18, %s1863_s19  ;;  %p1869_p4 = scmp.lt.s32.totalorder %s1863_s19, %s1863_s19 }
 0x4d8   :  { %v1197_v9 = vmul.f32 %v1193_v32, %v2333_v42  ;;  %v1192_v37 = vsel %vm597_vm8, %v1189_v36, %v1191_v47  ;;  %v1195_v41 = vsel %vm597_vm8, %v1191_v47, %v1185_v62  ;;  %v2883_v42 = vmax.f32 %v2373_v63, 0.0  ;;  %v1803_v32 = vld [vmem:[#allocation2] sm:$0xff] }
 0x4d9   :  { %v1198_v27 = vmul.f32 %v1192_v37, %v2336_v5  ;;  %v1199_v33 = vmul.f32 %v1195_v41, %v2330_v15  ;;  %v2886_v5 = vmax.f32 %v2586_v40, 0.0  ;;  %v2887_v15 = vld [vmem:[#allocation16_spill] sm:$0xff]  ;;  %v1804_v41 = vld [vmem:[#allocation2 + $0x8] sm:$0xff]  ;;  %p1870_p5 = por %p1869_p4, %p1868_p3 }
 0x4da   :  { %1224 = vmatprep.subr.mxu0 %v1197_v9  ;;  %v1770_v50 = vpack.c.bf16 %v1064_v54, %v2883_v42  ;;  %v2888_v48 = vmax.f32 %v2887_v15, 0.0 }
 0x4db   :  { %1225 = vmatpush1.msra.mxu0 %v1196_v26  ;;  %1295 = vmatprep.subr.mxu1 %v1199_v33  ;;  %v1776_v58 = vpack.c.bf16 %v2886_v5, %v2885_v1  ;;  %p1871_p6 = pnand %p1870_p5, %p1864_p2 }
 0x4dc   :  { %1646 = vmatmul.mubr.msk.f32.vlgmr.msra.gmra.mrb[12].mxu0 %vm632_vm9, %v89_v52  ;;  %1296 = vmatpush1.msra.mxu1 %v1198_v27  ;;  %v1778_v11 = vpack.c.bf16 %v2889_v2, %v2888_v48  ;;  %v1805_v27 = vld [vmem:[#allocation2 + $0x10] sm:$0xff] }
 0x4dd   :  { %1769 = vmatprep.subr.bf16.mxu0 %v1768_v12  ;;  %1647 = vmatmul.mubr.msk.f32.vlgmr.msra.gmra.mrb[12].mxu1 %vm632_vm9, %v89_v52 }
 0x4de   :  { %1771 = vmatpush1.bf16.msra.mxu0 %v1770_v50  ;;  %1777 = vmatprep.subr.bf16.mxu1 %v1776_v58 }
 0x4df   :  { %1779 = vmatpush1.bf16.msra.mxu1 %v1778_v11  ;;  %1454 = vmatprep.mubr.f32.mxu0 %v2874_v28  ;;  %v1807_v11 = vld [vmem:[#allocation2 + $0x20] sm:$0xff] }
 0x4e0   :  { %1543 = vmatprep.mubr.f32.mxu1 %v2874_v28 }
 0x4e7   :  { %v112_v63 = vpop.permute.xlu1 %111 }
 0x4e8   :  { %v212_v54 = vadd.f32 %v2890_v18, %v112_v63  ;;  %v1203_v40 = vpop.permute.xlu0 %1202  ;;  %v214_v59 = vadd.f32 %v2891_v17, %v112_v63  ;;  %v301_v23 = vadd.f32 %v2892_v43, %v112_v63  ;;  %v303_v35 = vadd.f32 %v2893_v14, %v112_v63  ;;  %v1809_v17 = vld [vmem:[#allocation2 + $0x30] sm:$0xff] }
 0x4ea   :  { %v317_v45 = vmax.f32 %v212_v54, 0.0  ;;  %v318_v7 = vmax.f32 %v214_v59, 0.0  ;;  %v319_v34 = vmax.f32 %v301_v23, 0.0  ;;  %v320_v56 = vmax.f32 %v303_v35, 0.0 }
 0x4eb   :  { %v1361_v62 = vpop.permute.xlu1 %1360 }
 0x4ec   :  { %v1366_v37 = vpop.permute.xlu0 %1365 }
 0x4ef   :  { %v1371_v54 = vpop.permute.xlu1 %1370 }
 0x5af   :  { %v1274_v16 = vpop.f32.mrb[12].mxu0 }
 0x5b0   :  { %v1275_v57 = vadd.f32 %v1274_v16, %v1203_v40  ;;  %v1276_v6 = vpop.f32.mrb[13].mxu0  ;;  %v1345_v44 = vpop.f32.mrb[12].mxu1 }
 0x5b1   :  { %v1277_v61 = vadd.f32 %v1276_v6, %v1203_v40  ;;  %v1346_v49 = vadd.f32 %v1345_v44, %v1203_v40  ;;  %v1347_v51 = vpop.f32.mrb[13].mxu1 }
 0x5b2   :  { %v1350_v22 = vmax.f32 %v1275_v57, 0.0  ;;  %v1348_v8 = vadd.f32 %v1347_v51, %v1203_v40  ;;  %v1808_v40 = vld [vmem:[#allocation2 + $0x28] sm:$0xff]  ;;  %v1810_v57 = vld [vmem:[#allocation2 + $0x38] sm:$0xff] }
 0x5b3   :  { %v1351_v39 = vmax.f32 %v1277_v61, 0.0  ;;  %v1352_v53 = vmax.f32 %v1346_v49, 0.0 }
 0x5b4   :  { %v1774_v20 = vpack.c.bf16 %v317_v45, %v1350_v22  ;;  %v1353_v24 = vmax.f32 %v1348_v8, 0.0 }
 0x5b5   :  { %v1772_v30 = vpack.c.bf16 %v318_v7, %v1351_v39  ;;  %v1782_v13 = vpack.c.bf16 %v319_v34, %v1352_v53  ;;  %v1811_v7 = vld [vmem:[#allocation2 + $0x40] sm:$0xff]  ;;  %v1376_v53 = vpop.permute.xlu0 %1375 }
 0x5b6   :  { %v1780_v10 = vpack.c.bf16 %v320_v56, %v1353_v24  ;;  %v1813_v24 = vld [vmem:[#allocation2 + $0x50] sm:$0xff] }
 0x5b7   :  { %1773 = vmatprep.subr.bf16.mxu0 %v1772_v30 }
 0x5b8   :  { %1775 = vmatpush1.bf16.msra.mxu0 %v1774_v20  ;;  %1781 = vmatprep.subr.bf16.mxu1 %v1780_v10  ;;  %v1812_v20 = vld [vmem:[#allocation2 + $0x48] sm:$0xff] }
 0x5b9   :  { %1783 = vmatpush1.bf16.msra.mxu1 %v1782_v13 }
 0x5bb   :  { %1648 = vmatmul.mubr.msk.f32.vlgmr.msra.gmra.mrb[14].mxu0 %vm114_vm0, %v1354_v19 }
 0x5bc   :  { %1652 = vmatmul.mubr.msk.f32.vlgmr.msra.gmra.mrb[14].mxu1 %vm114_vm0, %v1354_v19  ;;  %1460 = vmatprep.mubr.f32.mxu0 %v2874_v28  ;;  %v1814_v19 = vld [vmem:[#allocation2 + $0x58] sm:$0xff] }
 0x5bd   :  { %1549 = vmatprep.mubr.f32.mxu1 %v2874_v28 }
 0x5bf   :  { %1649 = vmatmul.mubr.msk.f32.gmra.mrb[16].mxu0 %vm114_vm0, %v1355_v60 }
 0x5c0   :  { %1653 = vmatmul.mubr.msk.f32.gmra.mrb[16].mxu1 %vm114_vm0, %v1355_v60  ;;  %1466 = vmatprep.mubr.f32.mxu0 %v2874_v28 }
 0x5c1   :  { %1555 = vmatprep.mubr.f32.mxu1 %v2874_v28 }
 0x5c3   :  { %1650 = vmatmul.mubr.msk.f32.gmra.mrb[18].mxu0 %vm114_vm0, %v1356_v29 }
 0x5c4   :  { %1654 = vmatmul.mubr.msk.f32.gmra.mrb[18].mxu1 %vm114_vm0, %v1356_v29  ;;  %1472 = vmatprep.mubr.f32.mxu0 %v2874_v28 }
 0x5c5   :  { %1561 = vmatprep.mubr.f32.mxu1 %v2874_v28 }
 0x5c7   :  { %1651 = vmatmul.mubr.msk.f32.gmra.mrb[20].mxu0 %vm114_vm0, %v1357_v0 }
 0x5c8   :  { %1655 = vmatmul.mubr.msk.f32.gmra.mrb[20].mxu1 %vm114_vm0, %v1357_v0 }
 0x68e   :  { %v1456_v3 = vpop.f32.mrb[14].mxu0 }
 0x68f   :  { %v1457_v55 = vadd.f32 %v1456_v3, %v1361_v62  ;;  %v1458_v4 = vpop.f32.mrb[15].mxu0  ;;  %v1545_v31 = vpop.f32.mrb[14].mxu1 }
 0x690   :  { %v1459_v38 = vadd.f32 %v1458_v4, %v1361_v62  ;;  %v1546_v21 = vadd.f32 %v1545_v31, %v1361_v62  ;;  %v1547_v36 = vpop.f32.mrb[15].mxu1 }
 0x691   :  { %v1568_v47 = vadd.f32 %v1803_v32, %v1457_v55  ;;  %v1548_v9 = vadd.f32 %v1547_v36, %v1361_v62  ;;  %v1815_v36 = vld [vmem:[#allocation2 + $0x60] sm:$0xff] }
 0x692   :  { %v1569_v26 = vadd.f32 %v1804_v41, %v1459_v38  ;;  %v1570_v28 = vadd.f32 %v1805_v27, %v1546_v21  ;;  %v1462_v33 = vpop.f32.mrb[16].mxu0  ;;  %v1817_v41 = vld [vmem:[#allocation2 + $0x70] sm:$0xff] }
 0x693   :  { %v1584_v52 = vmax.f32 %v1568_v47, 0.0  ;;  %v1571_v12 = vadd.f32 %v1806_v25, %v1548_v9  ;;  %v1463_v42 = vadd.f32 %v1462_v33, %v1366_v37  ;;  %v1464_v50 = vpop.f32.mrb[17].mxu0  ;;  %v1551_v46 = vpop.f32.mrb[16].mxu1  ;;  %v1816_v9 = vld [vmem:[#allocation2 + $0x68] sm:$0xff] }
 0x694   :  { %v1585_v1 = vmax.f32 %v1569_v26, 0.0  ;;  %v1586_v5 = vmax.f32 %v1570_v28, 0.0  ;;  %v1465_v58 = vadd.f32 %v1464_v50, %v1366_v37  ;;  %v1552_v15 = vadd.f32 %v1551_v46, %v1366_v37  ;;  %v1553_v48 = vpop.f32.mrb[17].mxu1  ;;  %v1818_v28 = vld [vmem:[#allocation2 + $0x78] sm:$0xff] }
 0x695   :  { %1600 = vst [vmem:[#allocation7] sm:$0xff] %v1584_v52  ;;  %v1587_v2 = vmax.f32 %v1571_v12, 0.0  ;;  %v1572_v63 = vadd.f32 %v1807_v11, %v1463_v42  ;;  %v1554_v18 = vadd.f32 %v1553_v48, %v1366_v37 }
 0x696   :  { %1601 = vst [vmem:[#allocation7 + $0x8] sm:$0xff] %v1585_v1  ;;  %1602 = vst [vmem:[#allocation7 + $0x10] sm:$0xff] %v1586_v5  ;;  %v1573_v16 = vadd.f32 %v1808_v40, %v1465_v58  ;;  %v1574_v59 = vadd.f32 %v1809_v17, %v1552_v15  ;;  %v1468_v43 = vpop.f32.mrb[18].mxu0 }
 0x697   :  { %1603 = vst [vmem:[#allocation7 + $0x18] sm:$0xff] %v1587_v2  ;;  %v1588_v23 = vmax.f32 %v1572_v63, 0.0  ;;  %v1575_v6 = vadd.f32 %v1810_v57, %v1554_v18  ;;  %v1469_v44 = vadd.f32 %v1468_v43, %v1371_v54  ;;  %v1470_v14 = vpop.f32.mrb[19].mxu0  ;;  %v1557_v35 = vpop.f32.mrb[18].mxu1 }
 0x698   :  { %v1589_v61 = vmax.f32 %v1573_v16, 0.0  ;;  %v1590_v49 = vmax.f32 %v1574_v59, 0.0  ;;  %v1471_v51 = vadd.f32 %v1470_v14, %v1371_v54  ;;  %v1558_v45 = vadd.f32 %v1557_v35, %v1371_v54  ;;  %v1559_v22 = vpop.f32.mrb[19].mxu1 }
 0x699   :  { %1604 = vst [vmem:[#allocation7 + $0x20] sm:$0xff] %v1588_v23  ;;  %v1591_v8 = vmax.f32 %v1575_v6, 0.0  ;;  %v1576_v39 = vadd.f32 %v1811_v7, %v1469_v44  ;;  %v1560_v34 = vadd.f32 %v1559_v22, %v1371_v54 }
 0x69a   :  { %1605 = vst [vmem:[#allocation7 + $0x28] sm:$0xff] %v1589_v61  ;;  %1606 = vst [vmem:[#allocation7 + $0x30] sm:$0xff] %v1590_v49  ;;  %v1577_v56 = vadd.f32 %v1812_v20, %v1471_v51  ;;  %v1578_v30 = vadd.f32 %v1813_v24, %v1558_v45  ;;  %v1474_v13 = vpop.f32.mrb[20].mxu0 }
 0x69b   :  { %1607 = vst [vmem:[#allocation7 + $0x38] sm:$0xff] %v1591_v8  ;;  %v1592_v10 = vmax.f32 %v1576_v39, 0.0  ;;  %v1579_v60 = vadd.f32 %v1814_v19, %v1560_v34  ;;  %v1475_v29 = vadd.f32 %v1474_v13, %v1376_v53  ;;  %v1476_v0 = vpop.f32.mrb[21].mxu0  ;;  %v1563_v62 = vpop.f32.mrb[20].mxu1 }
 0x69c   :  { %v1593_v3 = vmax.f32 %v1577_v56, 0.0  ;;  %v1594_v55 = vmax.f32 %v1578_v30, 0.0  ;;  %v1477_v4 = vadd.f32 %v1476_v0, %v1376_v53  ;;  %v1564_v31 = vadd.f32 %v1563_v62, %v1376_v53  ;;  %v1565_v38 = vpop.f32.mrb[21].mxu1 }
 0x69d   :  { %1608 = vst [vmem:[#allocation7 + $0x40] sm:$0xff] %v1592_v10  ;;  %v1595_v21 = vmax.f32 %v1579_v60, 0.0  ;;  %v1580_v32 = vadd.f32 %v1815_v36, %v1475_v29  ;;  %v1566_v47 = vadd.f32 %v1565_v38, %v1376_v53 }
 0x69e   :  { %1609 = vst [vmem:[#allocation7 + $0x48] sm:$0xff] %v1593_v3  ;;  %1610 = vst [vmem:[#allocation7 + $0x50] sm:$0xff] %v1594_v55  ;;  %v1581_v37 = vadd.f32 %v1816_v9, %v1477_v4  ;;  %v1582_v26 = vadd.f32 %v1817_v41, %v1564_v31 }
 0x69f   :  { %1611 = vst [vmem:[#allocation7 + $0x58] sm:$0xff] %v1595_v21  ;;  %v1596_v27 = vmax.f32 %v1580_v32, 0.0  ;;  %v1583_v33 = vadd.f32 %v1818_v28, %v1566_v47 }
 0x6a0   :  { %v1597_v52 = vmax.f32 %v1581_v37, 0.0  ;;  %v1598_v25 = vmax.f32 %v1582_v26, 0.0 }
 0x6a1   :  { %1612 = vst [vmem:[#allocation7 + $0x60] sm:$0xff] %v1596_v27  ;;  %v1599_v12 = vmax.f32 %v1583_v33, 0.0 }
 0x6a2   :  { %1613 = vst [vmem:[#allocation7 + $0x68] sm:$0xff] %v1597_v52  ;;  %1614 = vst [vmem:[#allocation7 + $0x70] sm:$0xff] %v1598_v25 }
 0x6a3   :  { %1615 = vst [vmem:[#allocation7 + $0x78] sm:$0xff] %v1599_v12 }
 0x6a4   :  { %1874 = shalt.err (!%p1871_p6)
}
 0x6a5   :  { %s1875_s1 = scalar_lea.hbm %s2860_s6, 2048 }
 0x6a6   :  { %p1876_p7 = scmp.ne.s32.totalorder %s2860_s6, %s1875_s1  ;;  %p1879_p8 = scmp.lt.u32.totalorder %s1875_s1, %s2860_s6 }
 0x6a8   :  { %p1881_p9 = pnand %p1879_p8, %p1876_p7 }
 0x6aa   :  { %1884 = shalt.err (!%p1881_p9)
}
 0x6ab   :  { %1627 = dma.vmem_to_hbm [thread:$0]  %s1622_s18, 2048, %s2860_s6, [#allocation4], %s1892_s7, %s1892_s7, %s1893_s8  }
 0x6ac   :  { %1889 = dma.done.wait [#allocation4], 2048  }
 0x6ad   :  { %1890 = vsyncadd [#allocation4], 4294965248 }
 0x6ae   :  { %1631 = vsyncpa [#allocation3], 1 }
 0x6af   :  { %1632 = vsyncpa [#allocation6], 1 }
 0x6b0   :  { %1633 = vsyncpa [#allocation4], 1 }

</bundles_post_ra>
